<compile_context>
chip_gen: v6e
topology: v6e:2x2x1
jax: 0.10.0
libtpu: 0.0.40
codegen_flags: <defaults>
</compile_context>

<pallas_src>
import jax
import jax.numpy as jnp
from jax import lax
from jax.experimental import pallas as pl
from jax.experimental.pallas import tpu as pltpu


def _layer_norm(x, gamma, beta, eps=1e-5):
    mu = jnp.mean(x, axis=-1, keepdims=True)
    var = jnp.mean(jnp.square(x - mu), axis=-1, keepdims=True)
    return (x - mu) * lax.rsqrt(var + eps) * gamma + beta


def _quick_gelu(x):
    # x * sigmoid(1.702 * x), written with jnp.exp only (EUP-friendly, and
    # identical formula is used by the pure-JAX reference).
    return x * (1.0 / (1.0 + jnp.exp(-1.702 * x)))


def _clip_text_encoder_kernel(
        x_ref,                                   # (1, S, D)   embedded tokens
        ln1g_ref, ln1b_ref,                      # (1, 1, D)   pre-attn LN
        wq_ref, bq_ref, wk_ref, bk_ref,          # (1,nH,D,dH) / (1,nH,1,dH)
        wv_ref, bv_ref,
        wo_ref, bo_ref,                          # (1,nH,dH,D) / (1, 1, D)
        ln2g_ref, ln2b_ref,                      # (1, 1, D)   pre-MLP LN
        w1_ref, b1_ref,                          # (1, D, Hm)  / (1, 1, Hm)
        w2_ref, b2_ref,                          # (1, Hm, D)  / (1, 1, D)
        lnfg_ref, lnfb_ref,                      # (1, D)      final LN
        o_ref,                                   # (1, S, D)   last_hidden_state
        h_scr):                                  # (S, D) f32  residual stream
    l = pl.program_id(1)
    n_layers = pl.num_programs(1)

    num_heads = wq_ref.shape[1]
    head_dim = wq_ref.shape[3]
    scale = head_dim ** -0.5

    @pl.when(l == 0)
    def _():
        h_scr[...] = x_ref[0].astype(jnp.float32)

    h = h_scr[...]                               # (S, D) f32
    S = h.shape[0]

    # ---------------- causal multi-head self-attention (pre-LN) ------------
    hn = _layer_norm(h, ln1g_ref[0], ln1b_ref[0])

    rows = lax.broadcasted_iota(jnp.int32, (S, S), 0)
    cols = lax.broadcasted_iota(jnp.int32, (S, S), 1)
    causal = rows >= cols

    attn_out = jnp.zeros_like(h)
    for hd in range(num_heads):                  # static unroll over heads
        q = jnp.dot(hn, wq_ref[0, hd], preferred_element_type=jnp.float32) + bq_ref[0, hd]
        k = jnp.dot(hn, wk_ref[0, hd], preferred_element_type=jnp.float32) + bk_ref[0, hd]
        v = jnp.dot(hn, wv_ref[0, hd], preferred_element_type=jnp.float32) + bv_ref[0, hd]

        s = jnp.einsum("qd,kd->qk", q, k,
                       preferred_element_type=jnp.float32) * scale
        s = jnp.where(causal, s, -1e30)
        s = s - jnp.max(s, axis=-1, keepdims=True)
        p = jnp.exp(s)
        p = p / jnp.sum(p, axis=-1, keepdims=True)

        ctx = jnp.dot(p, v, preferred_element_type=jnp.float32)      # (S, dH)
        attn_out = attn_out + jnp.dot(ctx, wo_ref[0, hd],
                                      preferred_element_type=jnp.float32)
    h = h + attn_out + bo_ref[0]

    # ---------------- MLP block (pre-LN, quick-GELU) ------------------------
    hn = _layer_norm(h, ln2g_ref[0], ln2b_ref[0])
    m = jnp.dot(hn, w1_ref[0], preferred_element_type=jnp.float32) + b1_ref[0]
    m = _quick_gelu(m)
    h = h + jnp.dot(m, w2_ref[0], preferred_element_type=jnp.float32) + b2_ref[0]

    h_scr[...] = h

    @pl.when(l == n_layers - 1)
    def _():
        o_ref[0] = _layer_norm(h, lnfg_ref[...], lnfb_ref[...]).astype(o_ref.dtype)


def neuron_text_encoder(emb, params, attention_mask=None):
    """Pallas equivalent of NeuronTextEncoder.forward.

    emb:    (N, S) int32 token ids (the benchmark feeds tokenized prompts).
    params: dict of CLIP-text-encoder weights (see __main__ for shapes).
    Returns [last_hidden_state] with last_hidden_state: (N, S, D) float32.
    """
    del attention_mask  # causal mask is built inside the kernel
    N, S = emb.shape
    L, NH, D, DH = params["wq"].shape
    HM = params["w1"].shape[-1]

    # Embedding lookup (gather) stays in plain JAX; everything downstream
    # (the full transformer stack + final LN) runs inside the Pallas kernel.
    x = (params["token_embedding"][emb]
         + params["position_embedding"][:S][None]).astype(jnp.float32)

    act_map = lambda n, l: (n, 0, 0)
    lay3 = lambda n, l: (l, 0, 0)
    lay4 = lambda n, l: (l, 0, 0, 0)
    const2 = lambda n, l: (0, 0)

    weight_bytes = sum(int(v.size) * 4 for k, v in params.items()
                       if k not in ("token_embedding", "position_embedding"))
    flops = N * L * (3 * 2 * S * D * D            # q, k, v projections
                     + 2 * 2 * S * S * D          # scores + context
                     + 2 * S * D * D              # output projection
                     + 2 * 2 * S * D * HM)        # MLP
    cost = pl.CostEstimate(
        flops=flops,
        transcendentals=N * L * (NH * S * S + S * HM),
        bytes_accessed=2 * N * S * D * 4 + N * weight_bytes,
    )

    out = pl.pallas_call(
        _clip_text_encoder_kernel,
        out_shape=jax.ShapeDtypeStruct((N, S, D), jnp.float32),
        grid=(N, L),
        in_specs=[
            pl.BlockSpec((1, S, D), act_map),            # x (embedded tokens)
            pl.BlockSpec((1, 1, D), lay3),               # ln1 gamma
            pl.BlockSpec((1, 1, D), lay3),               # ln1 beta
            pl.BlockSpec((1, NH, D, DH), lay4),          # wq
            pl.BlockSpec((1, NH, 1, DH), lay4),          # bq
            pl.BlockSpec((1, NH, D, DH), lay4),          # wk
            pl.BlockSpec((1, NH, 1, DH), lay4),          # bk
            pl.BlockSpec((1, NH, D, DH), lay4),          # wv
            pl.BlockSpec((1, NH, 1, DH), lay4),          # bv
            pl.BlockSpec((1, NH, DH, D), lay4),          # wo
            pl.BlockSpec((1, 1, D), lay3),               # bo
            pl.BlockSpec((1, 1, D), lay3),               # ln2 gamma
            pl.BlockSpec((1, 1, D), lay3),               # ln2 beta
            pl.BlockSpec((1, D, HM), lay3),              # w1
            pl.BlockSpec((1, 1, HM), lay3),              # b1
            pl.BlockSpec((1, HM, D), lay3),              # w2
            pl.BlockSpec((1, 1, D), lay3),               # b2
            pl.BlockSpec((1, D), const2),                # final ln gamma
            pl.BlockSpec((1, D), const2),                # final ln beta
        ],
        out_specs=pl.BlockSpec((1, S, D), act_map),
        scratch_shapes=[pltpu.VMEM((S, D), jnp.float32)],
        compiler_params=pltpu.CompilerParams(
            dimension_semantics=("parallel", "arbitrary")),
        cost_estimate=cost,
    )(x,
      params["ln1_g"], params["ln1_b"],
      params["wq"], params["bq"], params["wk"], params["bk"],
      params["wv"], params["bv"], params["wo"], params["bo"],
      params["ln2_g"], params["ln2_b"],
      params["w1"], params["b1"], params["w2"], params["b2"],
      params["lnf_g"], params["lnf_b"])

    return [out]


def _ref_forward(emb, p):
    """Pure-JAX reference of the same CLIP-style text encoder."""
    x = p["token_embedding"][emb] + p["position_embedding"][: emb.shape[1]][None]
    N, S, D = x.shape
    L, NH, _, DH = p["wq"].shape

    def ln(v, g, b, eps=1e-5):
        mu = v.mean(-1, keepdims=True)
        var = ((v - mu) ** 2).mean(-1, keepdims=True)
        return (v - mu) / jnp.sqrt(var + eps) * g + b

    causal = jnp.tril(jnp.ones((S, S), bool))
    h = x
    for l in range(L):
        hn = ln(h, p["ln1_g"][l], p["ln1_b"][l])
        q = jnp.einsum("nsd,hde->nhse", hn, p["wq"][l]) + p["bq"][l][None]
        k = jnp.einsum("nsd,hde->nhse", hn, p["wk"][l]) + p["bk"][l][None]
        v = jnp.einsum("nsd,hde->nhse", hn, p["wv"][l]) + p["bv"][l][None]
        s = jnp.einsum("nhqe,nhke->nhqk", q, k) * (DH ** -0.5)
        s = jnp.where(causal, s, -1e30)
        a = jax.nn.softmax(s, axis=-1)
        ctx = jnp.einsum("nhqk,nhke->nhqe", a, v)
        attn = jnp.einsum("nhse,hed->nsd", ctx, p["wo"][l]) + p["bo"][l]
        h = h + attn
        hn = ln(h, p["ln2_g"][l], p["ln2_b"][l])
        m = jnp.einsum("nsd,de->nse", hn, p["w1"][l]) + p["b1"][l]
        m = m * (1.0 / (1.0 + jnp.exp(-1.702 * m)))
        h = h + jnp.einsum("nse,ed->nsd", m, p["w2"][l]) + p["b2"][l]
    return ln(h, p["lnf_g"][0], p["lnf_b"][0])


if __name__ == "__main__":
    # Small shapes consistent with a CLIP text encoder: batch=2, seq=8,
    # hidden=32, 2 heads of dim 16, MLP hidden 128, 2 layers, vocab 1000.
    N, S, D = 2, 8, 32
    L, NH, DH, HM, V = 2, 2, 16, 128, 1000

    ks = iter(jax.random.split(jax.random.PRNGKey(0), 32))

    def nrm(shape, std):
        return std * jax.random.normal(next(ks), shape, jnp.float32)

    params = dict(
        token_embedding=nrm((V, D), 0.02),
        position_embedding=nrm((S, D), 0.02),
        ln1_g=1.0 + nrm((L, 1, D), 0.02), ln1_b=nrm((L, 1, D), 0.02),
        wq=nrm((L, NH, D, DH), D ** -0.5), bq=nrm((L, NH, 1, DH), 0.02),
        wk=nrm((L, NH, D, DH), D ** -0.5), bk=nrm((L, NH, 1, DH), 0.02),
        wv=nrm((L, NH, D, DH), D ** -0.5), bv=nrm((L, NH, 1, DH), 0.02),
        wo=nrm((L, NH, DH, D), D ** -0.5), bo=nrm((L, 1, D), 0.02),
        ln2_g=1.0 + nrm((L, 1, D), 0.02), ln2_b=nrm((L, 1, D), 0.02),
        w1=nrm((L, D, HM), D ** -0.5), b1=nrm((L, 1, HM), 0.02),
        w2=nrm((L, HM, D), HM ** -0.5), b2=nrm((L, 1, D), 0.02),
        lnf_g=1.0 + nrm((1, D), 0.02), lnf_b=nrm((1, D), 0.02),
    )

    emb = jax.random.randint(next(ks), (N, S), 0, V, dtype=jnp.int32)

    outs = neuron_text_encoder(emb, params)
    outs = jax.block_until_ready(outs)
    out = outs[0]

    ref = _ref_forward(emb, params)

    assert isinstance(outs, list) and len(outs) == 1
    assert out.shape == (N, S, D) and out.dtype == jnp.float32
    max_err = float(jnp.max(jnp.abs(out - ref)))
    assert max_err < 2e-2, f"max abs error {max_err}"

    print("KERNEL_OK")
</pallas_src>

<mosaic_0001>
module attributes {stable_mosaic.version = 11 : i64} {
  func.func @_clip_text_encoder_kernel(%arg0: i32, %arg1: i32, %arg2: memref<1x8x32xf32, #tpu.memory_space<vmem>>, %arg3: memref<1x1x32xf32, #tpu.memory_space<vmem>>, %arg4: memref<1x1x32xf32, #tpu.memory_space<vmem>>, %arg5: memref<1x2x32x16xf32, #tpu.memory_space<vmem>>, %arg6: memref<1x2x1x16xf32, #tpu.memory_space<vmem>>, %arg7: memref<1x2x32x16xf32, #tpu.memory_space<vmem>>, %arg8: memref<1x2x1x16xf32, #tpu.memory_space<vmem>>, %arg9: memref<1x2x32x16xf32, #tpu.memory_space<vmem>>, %arg10: memref<1x2x1x16xf32, #tpu.memory_space<vmem>>, %arg11: memref<1x2x16x32xf32, #tpu.memory_space<vmem>>, %arg12: memref<1x1x32xf32, #tpu.memory_space<vmem>>, %arg13: memref<1x1x32xf32, #tpu.memory_space<vmem>>, %arg14: memref<1x1x32xf32, #tpu.memory_space<vmem>>, %arg15: memref<1x32x128xf32, #tpu.memory_space<vmem>>, %arg16: memref<1x1x128xf32, #tpu.memory_space<vmem>>, %arg17: memref<1x128x32xf32, #tpu.memory_space<vmem>>, %arg18: memref<1x1x32xf32, #tpu.memory_space<vmem>>, %arg19: memref<1x32xf32, #tpu.memory_space<vmem>>, %arg20: memref<1x32xf32, #tpu.memory_space<vmem>>, %arg21: memref<1x8x32xf32, #tpu.memory_space<vmem>>, %arg22: memref<8x32xf32, #tpu.memory_space<vmem>>) attributes {dimension_semantics = [#tpu.dimension_semantics<parallel>, #tpu.dimension_semantics<arbitrary>], iteration_bounds = array<i64: 2, 2>, scalar_prefetch = 0 : i64, scratch_operands = 1 : i64, tpu.core_type = #tpu.core_type<tc>, window_params = [{transform_indices = @transform_0, window_bounds = array<i64: 1, 8, 32>}, {transform_indices = @transform_1, window_bounds = array<i64: 1, 1, 32>}, {transform_indices = @transform_2, window_bounds = array<i64: 1, 1, 32>}, {transform_indices = @transform_3, window_bounds = array<i64: 1, 2, 32, 16>}, {transform_indices = @transform_4, window_bounds = array<i64: 1, 2, 1, 16>}, {transform_indices = @transform_5, window_bounds = array<i64: 1, 2, 32, 16>}, {transform_indices = @transform_6, window_bounds = array<i64: 1, 2, 1, 16>}, {transform_indices = @transform_7, window_bounds = array<i64: 1, 2, 32, 16>}, {transform_indices = @transform_8, window_bounds = array<i64: 1, 2, 1, 16>}, {transform_indices = @transform_9, window_bounds = array<i64: 1, 2, 16, 32>}, {transform_indices = @transform_10, window_bounds = array<i64: 1, 1, 32>}, {transform_indices = @transform_11, window_bounds = array<i64: 1, 1, 32>}, {transform_indices = @transform_12, window_bounds = array<i64: 1, 1, 32>}, {transform_indices = @transform_13, window_bounds = array<i64: 1, 32, 128>}, {transform_indices = @transform_14, window_bounds = array<i64: 1, 1, 128>}, {transform_indices = @transform_15, window_bounds = array<i64: 1, 128, 32>}, {transform_indices = @transform_16, window_bounds = array<i64: 1, 1, 32>}, {pipeline_mode = #tpu.pipeline_mode<synchronous>, transform_indices = @transform_17, window_bounds = array<i64: 1, 32>}, {pipeline_mode = #tpu.pipeline_mode<synchronous>, transform_indices = @transform_18, window_bounds = array<i64: 1, 32>}, {transform_indices = @transform_19, window_bounds = array<i64: 1, 8, 32>}]} {
    %c0_i32 = arith.constant 0 : i32
    %0 = arith.cmpi eq, %arg1, %c0_i32 : i32
    %1 = arith.extui %0 : i1 to i32
    %c0_i32_0 = arith.constant 0 : i32
    %2 = arith.cmpi ne, %1, %c0_i32_0 : i32
    scf.if %2 {
      %c0_122 = arith.constant 0 : index
      %c0_123 = arith.constant 0 : index
      %c0_124 = arith.constant 0 : index
      %172 = vector.load %arg2[%c0_122, %c0_123, %c0_124] : memref<1x8x32xf32, #tpu.memory_space<vmem>>, vector<1x8x32xf32>
      %173 = vector.shape_cast %172 : vector<1x8x32xf32> to vector<8x32xf32>
      %c0_125 = arith.constant 0 : index
      %c0_126 = arith.constant 0 : index
      %174 = vector.load %arg22[%c0_125, %c0_126] : memref<8x32xf32, #tpu.memory_space<vmem>>, vector<8x32xf32>
      tpu.vector_store %arg22[%c0_125, %c0_126], %173 {strides = array<i32>} : memref<8x32xf32, #tpu.memory_space<vmem>>, vector<8x32xf32>,
    } else {
    }
    %c0 = arith.constant 0 : index
    %c0_1 = arith.constant 0 : index
    %3 = vector.load %arg22[%c0, %c0_1] : memref<8x32xf32, #tpu.memory_space<vmem>>, vector<8x32xf32>
    %c0_2 = arith.constant 0 : index
    %c0_3 = arith.constant 0 : index
    %c0_4 = arith.constant 0 : index
    %4 = vector.load %arg3[%c0_2, %c0_3, %c0_4] : memref<1x1x32xf32, #tpu.memory_space<vmem>>, vector<1x1x32xf32>
    %5 = vector.shape_cast %4 : vector<1x1x32xf32> to vector<1x32xf32>
    %c0_5 = arith.constant 0 : index
    %c0_6 = arith.constant 0 : index
    %c0_7 = arith.constant 0 : index
    %6 = vector.load %arg4[%c0_5, %c0_6, %c0_7] : memref<1x1x32xf32, #tpu.memory_space<vmem>>, vector<1x1x32xf32>
    %7 = vector.shape_cast %6 : vector<1x1x32xf32> to vector<1x32xf32>
    %cst = arith.constant dense<0.000000e+00> : vector<8xf32>
    %8 = vector.multi_reduction <add>, %3, %cst [1] : vector<8x32xf32> to vector<8xf32>
    %9 = vector.shape_cast %8 : vector<8xf32> to vector<8x1xf32>
    %cst_8 = arith.constant 3.200000e+01 : f32
    %10 = vector.broadcast %cst_8 : f32 to vector<8x1xf32>
    %11 = arith.divf %9, %10 : vector<8x1xf32>
    %12 = vector.broadcast %11 : vector<8x1xf32> to vector<8x32xf32>
    %13 = arith.subf %3, %12 : vector<8x32xf32>
    %14 = arith.mulf %13, %13 : vector<8x32xf32>
    %cst_9 = arith.constant dense<0.000000e+00> : vector<8xf32>
    %15 = vector.multi_reduction <add>, %14, %cst_9 [1] : vector<8x32xf32> to vector<8xf32>
    %16 = vector.shape_cast %15 : vector<8xf32> to vector<8x1xf32>
    %cst_10 = arith.constant 3.200000e+01 : f32
    %17 = vector.broadcast %cst_10 : f32 to vector<8x1xf32>
    %18 = arith.divf %16, %17 : vector<8x1xf32>
    %19 = vector.broadcast %11 : vector<8x1xf32> to vector<8x32xf32>
    %20 = arith.subf %3, %19 : vector<8x32xf32>
    %cst_11 = arith.constant 9.99999974E-6 : f32
    %21 = vector.broadcast %cst_11 : f32 to vector<8x1xf32>
    %22 = arith.addf %18, %21 : vector<8x1xf32>
    %23 = math.rsqrt %22 : vector<8x1xf32>
    %24 = vector.broadcast %23 : vector<8x1xf32> to vector<8x32xf32>
    %25 = arith.mulf %20, %24 : vector<8x32xf32>
    %26 = vector.broadcast %5 : vector<1x32xf32> to vector<8x32xf32>
    %27 = arith.mulf %25, %26 : vector<8x32xf32>
    %28 = vector.broadcast %7 : vector<1x32xf32> to vector<8x32xf32>
    %29 = arith.addf %27, %28 : vector<8x32xf32>
    %30 = tpu.iota {dimensions = array<i32: 0>} : vector<8x8xi32>
    %31 = tpu.iota {dimensions = array<i32: 1>} : vector<8x8xi32>
    %32 = arith.cmpi sge, %30, %31 : vector<8x8xi32>
    %cst_12 = arith.constant 0.000000e+00 : f32
    %33 = vector.broadcast %cst_12 : f32 to vector<8x32xf32>
    %c0_13 = arith.constant 0 : index
    %c0_14 = arith.constant 0 : index
    %c0_15 = arith.constant 0 : index
    %c0_16 = arith.constant 0 : index
    %34 = vector.load %arg5[%c0_13, %c0_14, %c0_15, %c0_16] : memref<1x2x32x16xf32, #tpu.memory_space<vmem>>, vector<1x1x32x16xf32>
    %35 = vector.shape_cast %34 : vector<1x1x32x16xf32> to vector<32x16xf32>
    %cst_17 = arith.constant dense<0.000000e+00> : vector<8x16xf32>
    %36 = tpu.matmul %29, %35, %cst_17 {dimension_numbers = #tpu.dot_dimension_numbers<[1], [0], [0], [1], [0, 0, 1, 1], [], []>} : vector<8x32xf32>, vector<32x16xf32>, vector<8x16xf32> -> vector<8x16xf32>
    %c0_18 = arith.constant 0 : index
    %c0_19 = arith.constant 0 : index
    %c0_20 = arith.constant 0 : index
    %c0_21 = arith.constant 0 : index
    %37 = vector.load %arg6[%c0_18, %c0_19, %c0_20, %c0_21] : memref<1x2x1x16xf32, #tpu.memory_space<vmem>>, vector<1x1x1x16xf32>
    %38 = vector.shape_cast %37 : vector<1x1x1x16xf32> to vector<1x16xf32>
    %39 = vector.broadcast %38 : vector<1x16xf32> to vector<8x16xf32>
    %40 = arith.addf %36, %39 : vector<8x16xf32>
    %c0_22 = arith.constant 0 : index
    %c0_23 = arith.constant 0 : index
    %c0_24 = arith.constant 0 : index
    %c0_25 = arith.constant 0 : index
    %41 = vector.load %arg7[%c0_22, %c0_23, %c0_24, %c0_25] : memref<1x2x32x16xf32, #tpu.memory_space<vmem>>, vector<1x1x32x16xf32>
    %42 = vector.shape_cast %41 : vector<1x1x32x16xf32> to vector<32x16xf32>
    %cst_26 = arith.constant dense<0.000000e+00> : vector<8x16xf32>
    %43 = tpu.matmul %29, %42, %cst_26 {dimension_numbers = #tpu.dot_dimension_numbers<[1], [0], [0], [1], [0, 0, 1, 1], [], []>} : vector<8x32xf32>, vector<32x16xf32>, vector<8x16xf32> -> vector<8x16xf32>
    %c0_27 = arith.constant 0 : index
    %c0_28 = arith.constant 0 : index
    %c0_29 = arith.constant 0 : index
    %c0_30 = arith.constant 0 : index
    %44 = vector.load %arg8[%c0_27, %c0_28, %c0_29, %c0_30] : memref<1x2x1x16xf32, #tpu.memory_space<vmem>>, vector<1x1x1x16xf32>
    %45 = vector.shape_cast %44 : vector<1x1x1x16xf32> to vector<1x16xf32>
    %46 = vector.broadcast %45 : vector<1x16xf32> to vector<8x16xf32>
    %47 = arith.addf %43, %46 : vector<8x16xf32>
    %c0_31 = arith.constant 0 : index
    %c0_32 = arith.constant 0 : index
    %c0_33 = arith.constant 0 : index
    %c0_34 = arith.constant 0 : index
    %48 = vector.load %arg9[%c0_31, %c0_32, %c0_33, %c0_34] : memref<1x2x32x16xf32, #tpu.memory_space<vmem>>, vector<1x1x32x16xf32>
    %49 = vector.shape_cast %48 : vector<1x1x32x16xf32> to vector<32x16xf32>
    %cst_35 = arith.constant dense<0.000000e+00> : vector<8x16xf32>
    %50 = tpu.matmul %29, %49, %cst_35 {dimension_numbers = #tpu.dot_dimension_numbers<[1], [0], [0], [1], [0, 0, 1, 1], [], []>} : vector<8x32xf32>, vector<32x16xf32>, vector<8x16xf32> -> vector<8x16xf32>
    %c0_36 = arith.constant 0 : index
    %c0_37 = arith.constant 0 : index
    %c0_38 = arith.constant 0 : index
    %c0_39 = arith.constant 0 : index
    %51 = vector.load %arg10[%c0_36, %c0_37, %c0_38, %c0_39] : memref<1x2x1x16xf32, #tpu.memory_space<vmem>>, vector<1x1x1x16xf32>
    %52 = vector.shape_cast %51 : vector<1x1x1x16xf32> to vector<1x16xf32>
    %53 = vector.broadcast %52 : vector<1x16xf32> to vector<8x16xf32>
    %54 = arith.addf %50, %53 : vector<8x16xf32>
    "tpu.trace_start"() <{level = 10 : i32, message = "qd,kd->qk"}> : () -> ()
    %cst_40 = arith.constant dense<0.000000e+00> : vector<8x8xf32>
    %55 = tpu.matmul %40, %47, %cst_40 {dimension_numbers = #tpu.dot_dimension_numbers<[1], [1], [0], [0], [0, 0, 1, 0], [], []>} : vector<8x16xf32>, vector<8x16xf32>, vector<8x8xf32> -> vector<8x8xf32>
    "tpu.trace_stop"() : () -> ()
    %cst_41 = arith.constant 2.500000e-01 : f32
    %56 = vector.broadcast %cst_41 : f32 to vector<8x8xf32>
    %57 = arith.mulf %55, %56 : vector<8x8xf32>
    %cst_42 = arith.constant -1.000000e+30 : f32
    %58 = vector.broadcast %cst_42 : f32 to vector<8x8xf32>
    %59 = arith.select %32, %57, %58 : vector<8x8xi1>, vector<8x8xf32>
    %cst_43 = arith.constant dense<0xFF800000> : vector<8xf32>
    %60 = vector.multi_reduction <maximumf>, %59, %cst_43 [1] : vector<8x8xf32> to vector<8xf32>
    %61 = vector.shape_cast %60 : vector<8xf32> to vector<8x1xf32>
    %62 = vector.broadcast %61 : vector<8x1xf32> to vector<8x8xf32>
    %63 = arith.subf %59, %62 : vector<8x8xf32>
    %64 = math.exp %63 : vector<8x8xf32>
    %cst_44 = arith.constant dense<0.000000e+00> : vector<8xf32>
    %65 = vector.multi_reduction <add>, %64, %cst_44 [1] : vector<8x8xf32> to vector<8xf32>
    %66 = vector.shape_cast %65 : vector<8xf32> to vector<8x1xf32>
    %67 = vector.broadcast %66 : vector<8x1xf32> to vector<8x8xf32>
    %68 = arith.divf %64, %67 : vector<8x8xf32>
    %cst_45 = arith.constant dense<0.000000e+00> : vector<8x16xf32>
    %69 = tpu.matmul %68, %54, %cst_45 {dimension_numbers = #tpu.dot_dimension_numbers<[1], [0], [0], [1], [0, 0, 1, 1], [], []>} : vector<8x8xf32>, vector<8x16xf32>, vector<8x16xf32> -> vector<8x16xf32>
    %c0_46 = arith.constant 0 : index
    %c0_47 = arith.constant 0 : index
    %c0_48 = arith.constant 0 : index
    %c0_49 = arith.constant 0 : index
    %70 = vector.load %arg11[%c0_46, %c0_47, %c0_48, %c0_49] : memref<1x2x16x32xf32, #tpu.memory_space<vmem>>, vector<1x1x16x32xf32>
    %71 = vector.shape_cast %70 : vector<1x1x16x32xf32> to vector<16x32xf32>
    %cst_50 = arith.constant dense<0.000000e+00> : vector<8x32xf32>
    %72 = tpu.matmul %69, %71, %cst_50 {dimension_numbers = #tpu.dot_dimension_numbers<[1], [0], [0], [1], [0, 0, 1, 1], [], []>} : vector<8x16xf32>, vector<16x32xf32>, vector<8x32xf32> -> vector<8x32xf32>
    %73 = arith.addf %33, %72 : vector<8x32xf32>
    %c0_51 = arith.constant 0 : index
    %c1 = arith.constant 1 : index
    %c0_52 = arith.constant 0 : index
    %c0_53 = arith.constant 0 : index
    %74 = vector.load %arg5[%c0_51, %c1, %c0_52, %c0_53] : memref<1x2x32x16xf32, #tpu.memory_space<vmem>>, vector<1x1x32x16xf32>
    %75 = vector.shape_cast %74 : vector<1x1x32x16xf32> to vector<32x16xf32>
    %cst_54 = arith.constant dense<0.000000e+00> : vector<8x16xf32>
    %76 = tpu.matmul %29, %75, %cst_54 {dimension_numbers = #tpu.dot_dimension_numbers<[1], [0], [0], [1], [0, 0, 1, 1], [], []>} : vector<8x32xf32>, vector<32x16xf32>, vector<8x16xf32> -> vector<8x16xf32>
    %c0_55 = arith.constant 0 : index
    %c1_56 = arith.constant 1 : index
    %c0_57 = arith.constant 0 : index
    %c0_58 = arith.constant 0 : index
    %77 = vector.load %arg6[%c0_55, %c1_56, %c0_57, %c0_58] : memref<1x2x1x16xf32, #tpu.memory_space<vmem>>, vector<1x1x1x16xf32>
    %78 = vector.shape_cast %77 : vector<1x1x1x16xf32> to vector<1x16xf32>
    %79 = vector.broadcast %78 : vector<1x16xf32> to vector<8x16xf32>
    %80 = arith.addf %76, %79 : vector<8x16xf32>
    %c0_59 = arith.constant 0 : index
    %c1_60 = arith.constant 1 : index
    %c0_61 = arith.constant 0 : index
    %c0_62 = arith.constant 0 : index
    %81 = vector.load %arg7[%c0_59, %c1_60, %c0_61, %c0_62] : memref<1x2x32x16xf32, #tpu.memory_space<vmem>>, vector<1x1x32x16xf32>
    %82 = vector.shape_cast %81 : vector<1x1x32x16xf32> to vector<32x16xf32>
    %cst_63 = arith.constant dense<0.000000e+00> : vector<8x16xf32>
    %83 = tpu.matmul %29, %82, %cst_63 {dimension_numbers = #tpu.dot_dimension_numbers<[1], [0], [0], [1], [0, 0, 1, 1], [], []>} : vector<8x32xf32>, vector<32x16xf32>, vector<8x16xf32> -> vector<8x16xf32>
    %c0_64 = arith.constant 0 : index
    %c1_65 = arith.constant 1 : index
    %c0_66 = arith.constant 0 : index
    %c0_67 = arith.constant 0 : index
    %84 = vector.load %arg8[%c0_64, %c1_65, %c0_66, %c0_67] : memref<1x2x1x16xf32, #tpu.memory_space<vmem>>, vector<1x1x1x16xf32>
    %85 = vector.shape_cast %84 : vector<1x1x1x16xf32> to vector<1x16xf32>
    %86 = vector.broadcast %85 : vector<1x16xf32> to vector<8x16xf32>
    %87 = arith.addf %83, %86 : vector<8x16xf32>
    %c0_68 = arith.constant 0 : index
    %c1_69 = arith.constant 1 : index
    %c0_70 = arith.constant 0 : index
    %c0_71 = arith.constant 0 : index
    %88 = vector.load %arg9[%c0_68, %c1_69, %c0_70, %c0_71] : memref<1x2x32x16xf32, #tpu.memory_space<vmem>>, vector<1x1x32x16xf32>
    %89 = vector.shape_cast %88 : vector<1x1x32x16xf32> to vector<32x16xf32>
    %cst_72 = arith.constant dense<0.000000e+00> : vector<8x16xf32>
    %90 = tpu.matmul %29, %89, %cst_72 {dimension_numbers = #tpu.dot_dimension_numbers<[1], [0], [0], [1], [0, 0, 1, 1], [], []>} : vector<8x32xf32>, vector<32x16xf32>, vector<8x16xf32> -> vector<8x16xf32>
    %c0_73 = arith.constant 0 : index
    %c1_74 = arith.constant 1 : index
    %c0_75 = arith.constant 0 : index
    %c0_76 = arith.constant 0 : index
    %91 = vector.load %arg10[%c0_73, %c1_74, %c0_75, %c0_76] : memref<1x2x1x16xf32, #tpu.memory_space<vmem>>, vector<1x1x1x16xf32>
    %92 = vector.shape_cast %91 : vector<1x1x1x16xf32> to vector<1x16xf32>
    %93 = vector.broadcast %92 : vector<1x16xf32> to vector<8x16xf32>
    %94 = arith.addf %90, %93 : vector<8x16xf32>
    "tpu.trace_start"() <{level = 10 : i32, message = "qd,kd->qk"}> : () -> ()
    %cst_77 = arith.constant dense<0.000000e+00> : vector<8x8xf32>
    %95 = tpu.matmul %80, %87, %cst_77 {dimension_numbers = #tpu.dot_dimension_numbers<[1], [1], [0], [0], [0, 0, 1, 0], [], []>} : vector<8x16xf32>, vector<8x16xf32>, vector<8x8xf32> -> vector<8x8xf32>
    "tpu.trace_stop"() : () -> ()
    %cst_78 = arith.constant 2.500000e-01 : f32
    %96 = vector.broadcast %cst_78 : f32 to vector<8x8xf32>
    %97 = arith.mulf %95, %96 : vector<8x8xf32>
    %cst_79 = arith.constant -1.000000e+30 : f32
    %98 = vector.broadcast %cst_79 : f32 to vector<8x8xf32>
    %99 = arith.select %32, %97, %98 : vector<8x8xi1>, vector<8x8xf32>
    %cst_80 = arith.constant dense<0xFF800000> : vector<8xf32>
    %100 = vector.multi_reduction <maximumf>, %99, %cst_80 [1] : vector<8x8xf32> to vector<8xf32>
    %101 = vector.shape_cast %100 : vector<8xf32> to vector<8x1xf32>
    %102 = vector.broadcast %101 : vector<8x1xf32> to vector<8x8xf32>
    %103 = arith.subf %99, %102 : vector<8x8xf32>
    %104 = math.exp %103 : vector<8x8xf32>
    %cst_81 = arith.constant dense<0.000000e+00> : vector<8xf32>
    %105 = vector.multi_reduction <add>, %104, %cst_81 [1] : vector<8x8xf32> to vector<8xf32>
    %106 = vector.shape_cast %105 : vector<8xf32> to vector<8x1xf32>
    %107 = vector.broadcast %106 : vector<8x1xf32> to vector<8x8xf32>
    %108 = arith.divf %104, %107 : vector<8x8xf32>
    %cst_82 = arith.constant dense<0.000000e+00> : vector<8x16xf32>
    %109 = tpu.matmul %108, %94, %cst_82 {dimension_numbers = #tpu.dot_dimension_numbers<[1], [0], [0], [1], [0, 0, 1, 1], [], []>} : vector<8x8xf32>, vector<8x16xf32>, vector<8x16xf32> -> vector<8x16xf32>
    %c0_83 = arith.constant 0 : index
    %c1_84 = arith.constant 1 : index
    %c0_85 = arith.constant 0 : index
    %c0_86 = arith.constant 0 : index
    %110 = vector.load %arg11[%c0_83, %c1_84, %c0_85, %c0_86] : memref<1x2x16x32xf32, #tpu.memory_space<vmem>>, vector<1x1x16x32xf32>
    %111 = vector.shape_cast %110 : vector<1x1x16x32xf32> to vector<16x32xf32>
    %cst_87 = arith.constant dense<0.000000e+00> : vector<8x32xf32>
    %112 = tpu.matmul %109, %111, %cst_87 {dimension_numbers = #tpu.dot_dimension_numbers<[1], [0], [0], [1], [0, 0, 1, 1], [], []>} : vector<8x16xf32>, vector<16x32xf32>, vector<8x32xf32> -> vector<8x32xf32>
    %113 = arith.addf %73, %112 : vector<8x32xf32>
    %114 = arith.addf %3, %113 : vector<8x32xf32>
    %c0_88 = arith.constant 0 : index
    %c0_89 = arith.constant 0 : index
    %c0_90 = arith.constant 0 : index
    %115 = vector.load %arg12[%c0_88, %c0_89, %c0_90] : memref<1x1x32xf32, #tpu.memory_space<vmem>>, vector<1x1x32xf32>
    %116 = vector.shape_cast %115 : vector<1x1x32xf32> to vector<1x32xf32>
    %117 = vector.broadcast %116 : vector<1x32xf32> to vector<8x32xf32>
    %118 = arith.addf %114, %117 : vector<8x32xf32>
    %c0_91 = arith.constant 0 : index
    %c0_92 = arith.constant 0 : index
    %c0_93 = arith.constant 0 : index
    %119 = vector.load %arg13[%c0_91, %c0_92, %c0_93] : memref<1x1x32xf32, #tpu.memory_space<vmem>>, vector<1x1x32xf32>
    %120 = vector.shape_cast %119 : vector<1x1x32xf32> to vector<1x32xf32>
    %c0_94 = arith.constant 0 : index
    %c0_95 = arith.constant 0 : index
    %c0_96 = arith.constant 0 : index
    %121 = vector.load %arg14[%c0_94, %c0_95, %c0_96] : memref<1x1x32xf32, #tpu.memory_space<vmem>>, vector<1x1x32xf32>
    %122 = vector.shape_cast %121 : vector<1x1x32xf32> to vector<1x32xf32>
    %cst_97 = arith.constant dense<0.000000e+00> : vector<8xf32>
    %123 = vector.multi_reduction <add>, %118, %cst_97 [1] : vector<8x32xf32> to vector<8xf32>
    %124 = vector.shape_cast %123 : vector<8xf32> to vector<8x1xf32>
    %cst_98 = arith.constant 3.200000e+01 : f32
    %125 = vector.broadcast %cst_98 : f32 to vector<8x1xf32>
    %126 = arith.divf %124, %125 : vector<8x1xf32>
    %127 = vector.broadcast %126 : vector<8x1xf32> to vector<8x32xf32>
    %128 = arith.subf %118, %127 : vector<8x32xf32>
    %129 = arith.mulf %128, %128 : vector<8x32xf32>
    %cst_99 = arith.constant dense<0.000000e+00> : vector<8xf32>
    %130 = vector.multi_reduction <add>, %129, %cst_99 [1] : vector<8x32xf32> to vector<8xf32>
    %131 = vector.shape_cast %130 : vector<8xf32> to vector<8x1xf32>
    %cst_100 = arith.constant 3.200000e+01 : f32
    %132 = vector.broadcast %cst_100 : f32 to vector<8x1xf32>
    %133 = arith.divf %131, %132 : vector<8x1xf32>
    %134 = vector.broadcast %126 : vector<8x1xf32> to vector<8x32xf32>
    %135 = arith.subf %118, %134 : vector<8x32xf32>
    %cst_101 = arith.constant 9.99999974E-6 : f32
    %136 = vector.broadcast %cst_101 : f32 to vector<8x1xf32>
    %137 = arith.addf %133, %136 : vector<8x1xf32>
    %138 = math.rsqrt %137 : vector<8x1xf32>
    %139 = vector.broadcast %138 : vector<8x1xf32> to vector<8x32xf32>
    %140 = arith.mulf %135, %139 : vector<8x32xf32>
    %141 = vector.broadcast %120 : vector<1x32xf32> to vector<8x32xf32>
    %142 = arith.mulf %140, %141 : vector<8x32xf32>
    %143 = vector.broadcast %122 : vector<1x32xf32> to vector<8x32xf32>
    %144 = arith.addf %142, %143 : vector<8x32xf32>
    %c0_102 = arith.constant 0 : index
    %c0_103 = arith.constant 0 : index
    %c0_104 = arith.constant 0 : index
    %145 = vector.load %arg15[%c0_102, %c0_103, %c0_104] : memref<1x32x128xf32, #tpu.memory_space<vmem>>, vector<1x32x128xf32>
    %146 = vector.shape_cast %145 : vector<1x32x128xf32> to vector<32x128xf32>
    %cst_105 = arith.constant dense<0.000000e+00> : vector<8x128xf32>
    %147 = tpu.matmul %144, %146, %cst_105 {dimension_numbers = #tpu.dot_dimension_numbers<[1], [0], [0], [1], [0, 0, 1, 1], [], []>} : vector<8x32xf32>, vector<32x128xf32>, vector<8x128xf32> -> vector<8x128xf32>
    %c0_106 = arith.constant 0 : index
    %c0_107 = arith.constant 0 : index
    %c0_108 = arith.constant 0 : index
    %148 = vector.load %arg16[%c0_106, %c0_107, %c0_108] : memref<1x1x128xf32, #tpu.memory_space<vmem>>, vector<1x1x128xf32>
    %149 = vector.shape_cast %148 : vector<1x1x128xf32> to vector<1x128xf32>
    %150 = vector.broadcast %149 : vector<1x128xf32> to vector<8x128xf32>
    %151 = arith.addf %147, %150 : vector<8x128xf32>
    %cst_109 = arith.constant -1.702000e+00 : f32
    %152 = vector.broadcast %cst_109 : f32 to vector<8x128xf32>
    %153 = arith.mulf %152, %151 : vector<8x128xf32>
    %154 = math.exp %153 : vector<8x128xf32>
    %cst_110 = arith.constant 1.000000e+00 : f32
    %155 = vector.broadcast %cst_110 : f32 to vector<8x128xf32>
    %156 = arith.addf %155, %154 : vector<8x128xf32>
    %cst_111 = arith.constant 1.000000e+00 : f32
    %157 = vector.broadcast %cst_111 : f32 to vector<8x128xf32>
    %158 = arith.divf %157, %156 : vector<8x128xf32>
    %159 = arith.mulf %151, %158 : vector<8x128xf32>
    %c0_112 = arith.constant 0 : index
    %c0_113 = arith.constant 0 : index
    %c0_114 = arith.constant 0 : index
    %160 = vector.load %arg17[%c0_112, %c0_113, %c0_114] : memref<1x128x32xf32, #tpu.memory_space<vmem>>, vector<1x128x32xf32>
    %161 = vector.shape_cast %160 : vector<1x128x32xf32> to vector<128x32xf32>
    %cst_115 = arith.constant dense<0.000000e+00> : vector<8x32xf32>
    %162 = tpu.matmul %159, %161, %cst_115 {dimension_numbers = #tpu.dot_dimension_numbers<[1], [0], [0], [1], [0, 0, 1, 1], [], []>} : vector<8x128xf32>, vector<128x32xf32>, vector<8x32xf32> -> vector<8x32xf32>
    %163 = arith.addf %118, %162 : vector<8x32xf32>
    %c0_116 = arith.constant 0 : index
    %c0_117 = arith.constant 0 : index
    %c0_118 = arith.constant 0 : index
    %164 = vector.load %arg18[%c0_116, %c0_117, %c0_118] : memref<1x1x32xf32, #tpu.memory_space<vmem>>, vector<1x1x32xf32>
    %165 = vector.shape_cast %164 : vector<1x1x32xf32> to vector<1x32xf32>
    %166 = vector.broadcast %165 : vector<1x32xf32> to vector<8x32xf32>
    %167 = arith.addf %163, %166 : vector<8x32xf32>
    %c0_119 = arith.constant 0 : index
    %c0_120 = arith.constant 0 : index
    %168 = vector.load %arg22[%c0_119, %c0_120] : memref<8x32xf32, #tpu.memory_space<vmem>>, vector<8x32xf32>
    tpu.vector_store %arg22[%c0_119, %c0_120], %167 {strides = array<i32>} : memref<8x32xf32, #tpu.memory_space<vmem>>, vector<8x32xf32>,
    %c1_i32 = arith.constant 1 : i32
    %169 = arith.cmpi eq, %arg1, %c1_i32 : i32
    %170 = arith.extui %169 : i1 to i32
    %c0_i32_121 = arith.constant 0 : i32
    %171 = arith.cmpi ne, %170, %c0_i32_121 : i32
    scf.if %171 {
      %c0_122 = arith.constant 0 : index
      %c0_123 = arith.constant 0 : index
      %172 = vector.load %arg19[%c0_122, %c0_123] : memref<1x32xf32, #tpu.memory_space<vmem>>, vector<1x32xf32>
      %c0_124 = arith.constant 0 : index
      %c0_125 = arith.constant 0 : index
      %173 = vector.load %arg20[%c0_124, %c0_125] : memref<1x32xf32, #tpu.memory_space<vmem>>, vector<1x32xf32>
      %cst_126 = arith.constant dense<0.000000e+00> : vector<8xf32>
      %174 = vector.multi_reduction <add>, %167, %cst_126 [1] : vector<8x32xf32> to vector<8xf32>
      %175 = vector.shape_cast %174 : vector<8xf32> to vector<8x1xf32>
      %cst_127 = arith.constant 3.200000e+01 : f32
      %176 = vector.broadcast %cst_127 : f32 to vector<8x1xf32>
      %177 = arith.divf %175, %176 : vector<8x1xf32>
      %178 = vector.broadcast %177 : vector<8x1xf32> to vector<8x32xf32>
      %179 = arith.subf %167, %178 : vector<8x32xf32>
      %180 = arith.mulf %179, %179 : vector<8x32xf32>
      %cst_128 = arith.constant dense<0.000000e+00> : vector<8xf32>
      %181 = vector.multi_reduction <add>, %180, %cst_128 [1] : vector<8x32xf32> to vector<8xf32>
      %182 = vector.shape_cast %181 : vector<8xf32> to vector<8x1xf32>
      %cst_129 = arith.constant 3.200000e+01 : f32
      %183 = vector.broadcast %cst_129 : f32 to vector<8x1xf32>
      %184 = arith.divf %182, %183 : vector<8x1xf32>
      %185 = vector.broadcast %177 : vector<8x1xf32> to vector<8x32xf32>
      %186 = arith.subf %167, %185 : vector<8x32xf32>
      %cst_130 = arith.constant 9.99999974E-6 : f32
      %187 = vector.broadcast %cst_130 : f32 to vector<8x1xf32>
      %188 = arith.addf %184, %187 : vector<8x1xf32>
      %189 = math.rsqrt %188 : vector<8x1xf32>
      %190 = vector.broadcast %189 : vector<8x1xf32> to vector<8x32xf32>
      %191 = arith.mulf %186, %190 : vector<8x32xf32>
      %192 = vector.broadcast %172 : vector<1x32xf32> to vector<8x32xf32>
      %193 = arith.mulf %191, %192 : vector<8x32xf32>
      %194 = vector.broadcast %173 : vector<1x32xf32> to vector<8x32xf32>
      %195 = arith.addf %193, %194 : vector<8x32xf32>
      %c0_131 = arith.constant 0 : index
      %c0_132 = arith.constant 0 : index
      %c0_133 = arith.constant 0 : index
      %196 = vector.load %arg21[%c0_131, %c0_132, %c0_133] : memref<1x8x32xf32, #tpu.memory_space<vmem>>, vector<1x8x32xf32>
      %197 = vector.shape_cast %196 : vector<1x8x32xf32> to vector<8x32xf32>
      %198 = vector.shape_cast %195 : vector<8x32xf32> to vector<1x8x32xf32>
      tpu.vector_store %arg21[%c0_131, %c0_132, %c0_133], %198 {strides = array<i32>} : memref<1x8x32xf32, #tpu.memory_space<vmem>>, vector<1x8x32xf32>,
    } else {
    }
    return
  }
  func.func @transform_0(%arg0: i32, %arg1: i32) -> (i32, i32, i32) {
    %c0_i32 = arith.constant 0 : i32
    %c0_i32_0 = arith.constant 0 : i32
    %c0_i32_1 = arith.constant 0 : i32
    return %arg0, %c0_i32, %c0_i32_0 : i32, i32, i32
  }
  func.func @transform_1(%arg0: i32, %arg1: i32) -> (i32, i32, i32) {
    %c0_i32 = arith.constant 0 : i32
    %c0_i32_0 = arith.constant 0 : i32
    %c0_i32_1 = arith.constant 0 : i32
    return %arg1, %c0_i32, %c0_i32_0 : i32, i32, i32
  }
  func.func @transform_2(%arg0: i32, %arg1: i32) -> (i32, i32, i32) {
    %c0_i32 = arith.constant 0 : i32
    %c0_i32_0 = arith.constant 0 : i32
    %c0_i32_1 = arith.constant 0 : i32
    return %arg1, %c0_i32, %c0_i32_0 : i32, i32, i32
  }
  func.func @transform_3(%arg0: i32, %arg1: i32) -> (i32, i32, i32, i32) {
    %c0_i32 = arith.constant 0 : i32
    %c0_i32_0 = arith.constant 0 : i32
    %c0_i32_1 = arith.constant 0 : i32
    %c0_i32_2 = arith.constant 0 : i32
    return %arg1, %c0_i32, %c0_i32_0, %c0_i32_1 : i32, i32, i32, i32
  }
  func.func @transform_4(%arg0: i32, %arg1: i32) -> (i32, i32, i32, i32) {
    %c0_i32 = arith.constant 0 : i32
    %c0_i32_0 = arith.constant 0 : i32
    %c0_i32_1 = arith.constant 0 : i32
    %c0_i32_2 = arith.constant 0 : i32
    return %arg1, %c0_i32, %c0_i32_0, %c0_i32_1 : i32, i32, i32, i32
  }
  func.func @transform_5(%arg0: i32, %arg1: i32) -> (i32, i32, i32, i32) {
    %c0_i32 = arith.constant 0 : i32
    %c0_i32_0 = arith.constant 0 : i32
    %c0_i32_1 = arith.constant 0 : i32
    %c0_i32_2 = arith.constant 0 : i32
    return %arg1, %c0_i32, %c0_i32_0, %c0_i32_1 : i32, i32, i32, i32
  }
  func.func @transform_6(%arg0: i32, %arg1: i32) -> (i32, i32, i32, i32) {
    %c0_i32 = arith.constant 0 : i32
    %c0_i32_0 = arith.constant 0 : i32
    %c0_i32_1 = arith.constant 0 : i32
    %c0_i32_2 = arith.constant 0 : i32
    return %arg1, %c0_i32, %c0_i32_0, %c0_i32_1 : i32, i32, i32, i32
  }
  func.func @transform_7(%arg0: i32, %arg1: i32) -> (i32, i32, i32, i32) {
    %c0_i32 = arith.constant 0 : i32
    %c0_i32_0 = arith.constant 0 : i32
    %c0_i32_1 = arith.constant 0 : i32
    %c0_i32_2 = arith.constant 0 : i32
    return %arg1, %c0_i32, %c0_i32_0, %c0_i32_1 : i32, i32, i32, i32
  }
  func.func @transform_8(%arg0: i32, %arg1: i32) -> (i32, i32, i32, i32) {
    %c0_i32 = arith.constant 0 : i32
    %c0_i32_0 = arith.constant 0 : i32
    %c0_i32_1 = arith.constant 0 : i32
    %c0_i32_2 = arith.constant 0 : i32
    return %arg1, %c0_i32, %c0_i32_0, %c0_i32_1 : i32, i32, i32, i32
  }
  func.func @transform_9(%arg0: i32, %arg1: i32) -> (i32, i32, i32, i32) {
    %c0_i32 = arith.constant 0 : i32
    %c0_i32_0 = arith.constant 0 : i32
    %c0_i32_1 = arith.constant 0 : i32
    %c0_i32_2 = arith.constant 0 : i32
    return %arg1, %c0_i32, %c0_i32_0, %c0_i32_1 : i32, i32, i32, i32
  }
  func.func @transform_10(%arg0: i32, %arg1: i32) -> (i32, i32, i32) {
    %c0_i32 = arith.constant 0 : i32
    %c0_i32_0 = arith.constant 0 : i32
    %c0_i32_1 = arith.constant 0 : i32
    return %arg1, %c0_i32, %c0_i32_0 : i32, i32, i32
  }
  func.func @transform_11(%arg0: i32, %arg1: i32) -> (i32, i32, i32) {
    %c0_i32 = arith.constant 0 : i32
    %c0_i32_0 = arith.constant 0 : i32
    %c0_i32_1 = arith.constant 0 : i32
    return %arg1, %c0_i32, %c0_i32_0 : i32, i32, i32
  }
  func.func @transform_12(%arg0: i32, %arg1: i32) -> (i32, i32, i32) {
    %c0_i32 = arith.constant 0 : i32
    %c0_i32_0 = arith.constant 0 : i32
    %c0_i32_1 = arith.constant 0 : i32
    return %arg1, %c0_i32, %c0_i32_0 : i32, i32, i32
  }
  func.func @transform_13(%arg0: i32, %arg1: i32) -> (i32, i32, i32) {
    %c0_i32 = arith.constant 0 : i32
    %c0_i32_0 = arith.constant 0 : i32
    %c0_i32_1 = arith.constant 0 : i32
    return %arg1, %c0_i32, %c0_i32_0 : i32, i32, i32
  }
  func.func @transform_14(%arg0: i32, %arg1: i32) -> (i32, i32, i32) {
    %c0_i32 = arith.constant 0 : i32
    %c0_i32_0 = arith.constant 0 : i32
    %c0_i32_1 = arith.constant 0 : i32
    return %arg1, %c0_i32, %c0_i32_0 : i32, i32, i32
  }
  func.func @transform_15(%arg0: i32, %arg1: i32) -> (i32, i32, i32) {
    %c0_i32 = arith.constant 0 : i32
    %c0_i32_0 = arith.constant 0 : i32
    %c0_i32_1 = arith.constant 0 : i32
    return %arg1, %c0_i32, %c0_i32_0 : i32, i32, i32
  }
  func.func @transform_16(%arg0: i32, %arg1: i32) -> (i32, i32, i32) {
    %c0_i32 = arith.constant 0 : i32
    %c0_i32_0 = arith.constant 0 : i32
    %c0_i32_1 = arith.constant 0 : i32
    return %arg1, %c0_i32, %c0_i32_0 : i32, i32, i32
  }
  func.func @transform_17(%arg0: i32, %arg1: i32) -> (i32, i32) {
    %c0_i32 = arith.constant 0 : i32
    %c0_i32_0 = arith.constant 0 : i32
    %c0_i32_1 = arith.constant 0 : i32
    return %c0_i32, %c0_i32_0 : i32, i32
  }
  func.func @transform_18(%arg0: i32, %arg1: i32) -> (i32, i32) {
    %c0_i32 = arith.constant 0 : i32
    %c0_i32_0 = arith.constant 0 : i32
    %c0_i32_1 = arith.constant 0 : i32
    return %c0_i32, %c0_i32_0 : i32, i32
  }
  func.func @transform_19(%arg0: i32, %arg1: i32) -> (i32, i32, i32) {
    %c0_i32 = arith.constant 0 : i32
    %c0_i32_0 = arith.constant 0 : i32
    %c0_i32_1 = arith.constant 0 : i32
    return %arg0, %c0_i32, %c0_i32_0 : i32, i32, i32
  }
}

</mosaic_0001>

<bundles_post_ra>
// kernel: tpu_custom_call.1
= control target key start
LH: loop header
LB: loop body
LE: loop exit
PB: predicated region body
PF: predicated region fallthrough
CT: control target
= control target key end

     0   :  { %s3425_s0 = inlined_call_operand.vmem [shape: f32[2,8,32], index: 0, kind: input, shape index: {}]   ;;  %s3426_s1 = inlined_call_operand.vmem [shape: f32[2,1,32], index: 1, kind: input, shape index: {}]   ;;  %s3427_s2 = inlined_call_operand.vmem [shape: f32[2,1,32], index: 2, kind: input, shape index: {}]   ;;  %s3428_s3 = inlined_call_operand.vmem [shape: f32[2,2,32,16], index: 3, kind: input, shape index: {}]   ;;  %s3429_s4 = inlined_call_operand.vmem [shape: f32[2,2,1,16], index: 4, kind: input, shape index: {}]   ;;  %s3430_s5 = inlined_call_operand.vmem [shape: f32[2,2,32,16], index: 5, kind: input, shape index: {}]   ;;  %s3431_s6 = inlined_call_operand.vmem [shape: f32[2,2,1,16], index: 6, kind: input, shape index: {}]   ;;  %s3432_s7 = inlined_call_operand.vmem [shape: f32[2,2,32,16], index: 7, kind: input, shape index: {}]   ;;  %s3433_s8 = inlined_call_operand.vmem [shape: f32[2,2,1,16], index: 8, kind: input, shape index: {}]   ;;  %s3434_s9 = inlined_call_operand.vmem [shape: f32[2,2,16,32], index: 9, kind: input, shape index: {}]   ;;  %s3435_s10 = inlined_call_operand.vmem [shape: f32[2,1,32], index: 10, kind: input, shape index: {}]   ;;  %s3436_s11 = inlined_call_operand.vmem [shape: f32[2,1,32], index: 11, kind: input, shape index: {}]   ;;  %s3437_s12 = inlined_call_operand.vmem [shape: f32[2,1,32], index: 12, kind: input, shape index: {}]   ;;  %s3438_s13 = inlined_call_operand.vmem [shape: f32[2,32,128], index: 13, kind: input, shape index: {}]   ;;  %s3439_s14 = inlined_call_operand.vmem [shape: f32[2,1,128], index: 14, kind: input, shape index: {}]   ;;  %s3440_s15 = inlined_call_operand.vmem [shape: f32[2,128,32], index: 15, kind: input, shape index: {}]   ;;  %s3441_s16 = inlined_call_operand.vmem [shape: f32[2,1,32], index: 16, kind: input, shape index: {}]   ;;  %s3442_s17 = inlined_call_operand.vmem [shape: f32[1,32], index: 17, kind: input, shape index: {}]   ;;  %s3443_s18 = inlined_call_operand.vmem [shape: f32[1,32], index: 18, kind: input, shape index: {}]   ;;  %s3444_s19 = inlined_call_operand.hbm [shape: f32[2,8,32], index: 19, kind: output, shape index: {}]  }
   0x1   :  { %3461 = sst [smem:[#allocation20_spill]] %s3425_s0 }
   0x2   :  { %3462 = sst [smem:[#allocation21_spill]] %s3426_s1 }
   0x3   :  { %3463 = sst [smem:[#allocation22_spill]] %s3427_s2 }
   0x4   :  { %3464 = sst [smem:[#allocation23_spill]] %s3428_s3 }
   0x5   :  { %3465 = sst [smem:[#allocation24_spill]] %s3429_s4 }
   0x6   :  { %3466 = sst [smem:[#allocation25_spill]] %s3430_s5 }
   0x7   :  { %3467 = sst [smem:[#allocation26_spill]] %s3431_s6 }
   0x8   :  { %3468 = sst [smem:[#allocation27_spill]] %s3432_s7 }
   0x9   :  { %3469 = sst [smem:[#allocation28_spill]] %s3433_s8 }
   0xa   :  { %3470 = sst [smem:[#allocation29_spill]] %s3434_s9 }
   0xb   :  { %3471 = sst [smem:[#allocation30_spill]] %s3435_s10 }
   0xc   :  { %3472 = sst [smem:[#allocation31_spill]] %s3436_s11 }
   0xd   :  { %3473 = sst [smem:[#allocation32_spill]] %s3440_s15 }
   0xe   :  { %3474 = sst [smem:[#allocation33_spill]] %s3441_s16 }
   0xf   :  { %3475 = sst [smem:[#allocation34_spill]] %s3442_s17 }
  0x10   :  { %3476 = sst [smem:[#allocation35_spill]] %s3443_s18 }
  0x11   :  { %3477 = sst [smem:[#allocation36_spill]] %s3444_s19 }
  0x12   :  { %24 = vsyncpa [#allocation4], 0 }
  0x13   :  { %26 = vsyncpa [#allocation4 + $0x1], 0  ;;  %s2990_s0 = smov 0   ;;  %s2992_s30 = smov 0  }
  0x14   :  { %s2994_s20 = smov 0   ;;  %s2996_s21 = smov 0  }
  0x15   :  { %s2998_s1 = smov 0   ;;  %s3000_s22 = smov 0  }
  0x16   :  { %s3002_s2 = smov 0   ;;  %s3004_s23 = smov 0  }
  0x17 LB: > { %3478 = sst [smem:[#allocation6_spill]] %s2857_s0  ;;  %s2409_s24 = sadd.s32 4294967295, %s2885_s23   ;;  %s2885_s23 = sphi %s3004_s23, %s32_s23   ;;  %s2881_s2 = sphi %s3002_s2, %s3536_s2   ;;  %s2877_s22 = sphi %s3000_s22, %s3535_s22   ;;  %s2873_s1 = sphi %s2998_s1, %s3534_s1   ;;  %s2869_s21 = sphi %s2996_s21, %s3533_s21   ;;  %s2865_s20 = sphi %s2994_s20, %s3532_s20   ;;  %s2861_s30 = sphi %s2992_s30, %s3531_s30   ;;  %s2857_s0 = sphi %s2990_s0, %s3530_s0  }
  0x18   : > { %3479 = sst [smem:[#allocation7_spill]] %s2861_s30  ;;  %s2410_s25 = sadd.s32 4294967294, %s2885_s23  }
  0x19   : > { %3480 = sst [smem:[#allocation8_spill]] %s2865_s20  ;;  %s41_s3 = sadd.s32 1, %s2877_s22 }
  0x1a   : > { %3481 = sst [smem:[#allocation9_spill]] %s2869_s21  ;;  %p42_p0 = scmp.ge.s32.totalorder %s41_s3, 2 }
  0x1b   : > { %3482 = sst [smem:[#allocation10_spill]] %s2873_s1  ;;  %s44_s26 = sadd.s32 1, %s2881_s2 }
  0x1c   : > { %3483 = sst [smem:[#allocation11_spill]] %s2877_s22  ;;  %p545_p1 = scmp.ne.s32.totalorder %s2865_s20, %s2861_s30 }
  0x1d   : > { %3484 = sst [smem:[#allocation12_spill]] %s2881_s2  ;;  %p546_p2 = scmp.eq.s32.totalorder %s2409_s24, 3 }
  0x1e   : > { %3485 = sst [smem:[#allocation13_spill]] %s2885_s23  ;;  %s3538_s3 = smov (%p42_p0, %s41_s3), 0 }
  0x1f   : > { %3486 = sst [smem:[#allocation14_spill]] %s3538_s3  ;;  %s3540_s26 = smov (!%p42_p0, %s44_s26), %s2881_s2 }
  0x20   : > { %p3039_p3 = por %p546_p2, %p545_p1  ;;  %p551_p4 = scmp.ne.s32.totalorder %s2861_s30, %s2857_s0 }
  0x21   : > { %p46_p5 = scmp.ge.s32.totalorder %s3540_s26, 2  ;;  %p552_p6 = scmp.eq.s32.totalorder %s2410_s25, 3 }
  0x22   : > { %s3487_s27 = scalar_select %p3039_p3, 1, 0 }
  0x23   : > { %p2413_p7 = scmp.ge.s32.totalorder %s2885_s23, 1  ;;  %p694_p8 = scmp.lt.s32.totalorder %s2885_s23, 5 }
  0x24   : > { %3488 = sst [smem:[#allocation15_spill]] %s3487_s27  ;;  %s3542_s26 = smov (%p46_p5, %s3540_s26), 0 }
  0x25   : > { %3489 = sst [smem:[#allocation16_spill]] %s3542_s26  ;;  %p3049_p9 = por %p552_p6, %p551_p4 }
  0x26   : > { %p695_p10 = pnand %p2413_p7, %p694_p8  ;;  %s532_s29 = ssub.s32 %s2881_s2, %s3542_s26 }
  0x27   : > { %s3490_s28 = scalar_select %p3049_p9, 1, 0 }
  0x28   : > { %s535_s24 = sadd.s32 1, %s2865_s20  ;;  %p533_p11 = scmp.eq.s32.totalorder %s532_s29, 0 }
  0x29   : > { %3491 = sst [smem:[#allocation17_spill]] %s3490_s28  ;;  %698 = sbr.rel (%p695_p10) target bundleno = 3281 (0xcd1), region = 96 }
  0x2a   : > { %s3057_s3 = scalar_select %p533_p11, %s2865_s20, %s535_s24  }
  0x2c   : > { %3492 = sst [smem:[#allocation18_spill]] %s3057_s3 }
  0x2e   : > { %s3451_s25 = sand.u32 1, %s2861_s30   ;;  %p812_p12 = scmp.lt.s32.totalorder %s2873_s1, 1 }
  0x2f   : > { %s3063_s22 = sshll.u32 %s3451_s25, 3  ;;  %p816_p13 = scmp.lt.s32.totalorder %s2869_s21, 1 }
  0x30   : > { %s813_s28 = scalar_select %p812_p12, %s2873_s1, 1 }
  0x31   : > { %s3068_s0 = scalar_select %p816_p13, %s2869_s21, 1 }
  0x32   : > { %s2415_s29 = sshll.u32 %s813_s28, 3  ;;  %s3493_s2 = sld [smem:[#allocation20_spill]] }
  0x33   : > { %s2484_s17 = sshll.u32 %s3068_s0, 6  ;;  %s3496_s16 = sld [smem:[#allocation23_spill]] }
  0x34   : > { %s2418_s26 = sshll.u32 %s3068_s0, 1  ;;  %s3497_s4 = sld [smem:[#allocation24_spill]] }
  0x35   : > { %s3499_s5 = sld [smem:[#allocation25_spill]]  ;;  %s2487_s19 = sshll.u32 %s3068_s0, 5 }
  0x36   : > { %s3500_s6 = sld [smem:[#allocation26_spill]]  ;;  %s862_s18 = scalar_lea.vmem %s3437_s12, %s3068_s0 }
  0x37   : > { %s3501_s7 = sld [smem:[#allocation27_spill]]  ;;  %s811_s15 = scalar_lea.vmem [#allocation3], %s3063_s22 }
  0x38   : > { %s815_s3 = scalar_lea.vmem %s3493_s2, %s2415_s29  ;;  %s3502_s8 = sld [smem:[#allocation28_spill]] }
  0x39   : > { %s3085_s28 = scalar_lea.vmem %s3496_s16, %s2484_s17  ;;  %s3503_s9 = sld [smem:[#allocation29_spill]] }
  0x3a   : > { %s3091_s20 = scalar_lea.vmem %s3497_s4, %s2418_s26  ;;  %s3506_s27 = sld [smem:[#allocation33_spill]] }
  0x3b   : > { %3498 = sst [smem:[#allocation19_spill]] %s3091_s20  ;;  %s3096_s30 = scalar_lea.vmem %s3499_s5, %s2484_s17 }
  0x3c   : > { %s3101_s29 = scalar_lea.vmem %s3500_s6, %s2418_s26  ;;  %s3508_s16 = sld [smem:[#allocation9_spill]] }
  0x3d   : > { %s3106_s21 = scalar_lea.vmem %s3501_s7, %s2484_s17  ;;  %s3134_s7 = scalar_lea.vmem %s3438_s13, %s2487_s19 }
  0x3e   : > { %s3111_s2 = scalar_lea.vmem %s3502_s8, %s2418_s26  ;;  %s870_s8 = scalar_lea.vmem %s3439_s14, %s3068_s0 }
  0x3f   : > { %s3117_s25 = scalar_lea.vmem %s3503_s9, %s2487_s19  ;;  %s2489_s9 = sshll.u32 %s3068_s0, 7 }
  0x40   : > { %s878_s10 = scalar_lea.vmem %s3506_s27, %s3068_s0  ;;  %s3507_s17 = sld [smem:[#allocation32_spill]] }
  0x42   : > { %p2431_p0 = scmp.ne.s32.totalorder %s3508_s16, 0 }
  0x44   : > { %882 = sbr.rel (%p2431_p0) target bundleno = 75 (0x4b), region = 100 }
  0x46   : > { %s3148_s11 = scalar_lea.vmem %s3507_s17, %s2489_s9 }
  0x49   : > { %v883_v0 = vld [vmem:[%s815_s3] sm:$0xff]  ;;  %vm884_vm0 = vcmask 261120  }
  0x4a   : > { %885 = vst.msk [vmem:[#allocation2] sm:$0xff] %vm884_vm0, %v883_v0 }
  0x4b PF: > { %vm889_vm1 = vcmask 261120   ;;  %v2887_v8 = vmov 0.0   ;;  %v926_v9 = vld [vmem:[%s3085_s28 + $0x18] sm:$0xff]  ;;  %v925_v10 = vld [vmem:[%s3085_s28 + $0x10] sm:$0xff]  ;;  %v924_v11 = vld [vmem:[%s3085_s28 + $0x8] sm:$0xff]  ;;  %vm2888_vm2 = vmmov 0   ;;  %v918_v50 = vlaneseq }
  0x4c   : > { %2556 = vmatprep.subr.mxu0 %v2887_v8  ;;  %2594 = vmatprep.subr.mxu1 %v2887_v8  ;;  %v923_v12 = vld [vmem:[%s3085_s28] sm:$0xff]  ;;  %s3509_s3 = sld [smem:[#allocation21_spill]]  ;;  %v1010_v22 = vld [vmem:[%s3096_s30 + $0x18] sm:$0xff]  ;;  %v1009_v23 = vld [vmem:[%s3096_s30 + $0x10] sm:$0xff]  ;;  %vm1169_vm3 = vcmask 130048   ;;  %vm1248_vm5 = vcmask 64512  }
  0x4d   : > { %2557 = vmatpush3.msra.mxu0 %v926_v9  ;;  %2564 = vmatprep.mubr.msk.f32.mxu0 %vm2888_vm2, %v2887_v8  ;;  %s3511_s24 = sld [smem:[#allocation22_spill]]  ;;  %v1008_v24 = vld [vmem:[%s3096_s30 + $0x8] sm:$0xff]  ;;  %v1007_v25 = vld [vmem:[%s3096_s30] sm:$0xff]  ;;  %v1091_v26 = vld [vmem:[%s3106_s21 + $0x18] sm:$0xff]  ;;  %v919_v51 = vshrl.u32 %v918_v50, 7  ;;  %v921_v52 = vand.u32 127, %v918_v50 }
  0x4e   : > { %2558 = vmatprep.subr.mxu0 %v2887_v8  ;;  %2596 = vmatprep.mubr.msk.f32.mxu1 %vm2888_vm2, %v2887_v8  ;;  %v1090_v27 = vld [vmem:[%s3106_s21 + $0x10] sm:$0xff]  ;;  %s3513_s23 = sld [smem:[#allocation19_spill]]  ;;  %v1089_v28 = vld [vmem:[%s3106_s21 + $0x8] sm:$0xff]  ;;  %v1088_v29 = vld [vmem:[%s3106_s21] sm:$0xff] }
  0x4f   : > { %2559 = vmatpush3.msra.mxu0 %v925_v10  ;;  %v2436_v32 = vld [vmem:[%s3101_s29] ss:$0 sm:$0xff]  ;;  %v2446_v38 = vld [vmem:[%s3085_s28 + $0x38] sm:$0xff]  ;;  %v2445_v40 = vld [vmem:[%s3085_s28 + $0x30] sm:$0xff]  ;;  %vm922_vm4 = vcmp.ge.s32.totalorder %v919_v51, %v921_v52  ;;  %s3516_s5 = sld [smem:[#allocation31_spill]] }
  0x50   : > { %2560 = vmatprep.subr.mxu0 %v2887_v8  ;;  %v2438_v39 = vld [vmem:[%s3111_s2] ss:$0 sm:$0xff]  ;;  %v2444_v42 = vld [vmem:[%s3085_s28 + $0x28] sm:$0xff]  ;;  %v2460_v46 = vld [vmem:[%s3106_s21 + $0x38] sm:$0xff] }
  0x51   : > { %v3152_v1 = vld [vmem:[#allocation2] sm:$0xff]  ;;  %2561 = vmatpush3.msra.mxu0 %v924_v11  ;;  %v2459_v47 = vld [vmem:[%s3106_s21 + $0x30] sm:$0xff]  ;;  %v2458_v48 = vld [vmem:[%s3106_s21 + $0x28] sm:$0xff] }
  0x52   : > { %v890_v2 = vsel %vm889_vm1, %v3152_v1, 0.0  ;;  %2562 = vmatprep.subr.mxu0 %v2887_v8  ;;  %s3510_s27 = scalar_lea.vmem %s3509_s3, %s3068_s0  ;;  %v2443_v45 = vld [vmem:[%s3085_s28 + $0x20] sm:$0xff]  ;;  %v2452_v9 = vld [vmem:[%s3096_s30 + $0x30] sm:$0xff]  ;;  %v2451_v10 = vld [vmem:[%s3096_s30 + $0x28] sm:$0xff] }
  0x53   : > { %891 = vadd.xlane.f32.xlu0 %v890_v2  ;;  %2563 = vmatpush3.msra.mxu0 %v923_v12  ;;  %v2432_v17 = vld [vmem:[%s3510_s27] ss:$0 sm:$0xff]  ;;  %s3512_s4 = scalar_lea.vmem %s3511_s24, %s3068_s0 }
  0x54   : > { %2567 = vmatprep.subr.mxu0 %v2887_v8  ;;  %v2433_v19 = vld [vmem:[%s3512_s4] ss:$0 sm:$0xff] }
  0x55   : > { %v2434_v34 = vld [vmem:[%s3513_s23] ss:$0 sm:$0xff]  ;;  %s3517_s1 = scalar_lea.vmem %s3516_s5, %s3068_s0 }
  0x56   : > { %v2457_v49 = vld [vmem:[%s3106_s21 + $0x20] sm:$0xff] }
  0x57   : > { %v2450_v11 = vld [vmem:[%s3096_s30 + $0x20] sm:$0xff] }
  0xdc   : > { %v892_v3 = vpop.xlane.xlu0 %891 }
  0xdd   : > { %v894_v4 = vmul.f32 0.03125, %v892_v3 }
  0xdf   : > { %v895_v5 = vsub.f32 %v3152_v1, %v894_v4 }
  0xe1   : > { %v896_v6 = vmul.f32 %v895_v5, %v895_v5 }
  0xe3   : > { %v897_v7 = vsel %vm889_vm1, %v896_v6, 0.0 }
  0xe4   : > { %898 = vadd.xlane.f32.xlu0 %v897_v7  ;;  %v2453_v7 = vld [vmem:[%s3096_s30 + $0x38] sm:$0xff] }
 0x16d   : > { %v899_v13 = vpop.xlane.xlu0 %898 }
 0x16e   : > { %v900_v14 = vmul.f32 0.03125, %v899_v13 }
 0x170   : > { %v901_v15 = vadd.f32 1e-05, %v900_v14  ;;  %v2455_v14 = vld [vmem:[%s3101_s29 + $0x1] ss:$0 sm:$0xff]  ;;  %s3514_s29 = sld [smem:[#allocation30_spill]] }
 0x172   : > { %2775 = vrsqrt.f32 %v901_v15 }
 0x176   : > { %s3515_s21 = scalar_lea.vmem %s3514_s29, %s3068_s0 }
 0x17f   : > { %v2776_v16 = vpop.eup %2775 }
 0x180   : > { %v903_v18 = vmul.f32 %v2776_v16, %v895_v5  ;;  %v2448_v16 = vld [vmem:[%s3513_s23 + $0x1] ss:$0 sm:$0xff] }
 0x182   : > { %v910_v20 = vmul.f32 %v2432_v17, %v903_v18  ;;  %v2462_v18 = vld [vmem:[%s3111_s2 + $0x1] ss:$0 sm:$0xff] }
 0x184   : > { %v3182_v21 = vadd.f32 %v2433_v19, %v910_v20 }
 0x186   : > { %2565 = vmatmul.mubr.msk.f32.vlgmr.msra.gmra.mxu0 %vm889_vm1, %v3182_v21 }
 0x187   : > { %2568 = vmatpush3.msra.mxu0 %v1010_v22  ;;  %2575 = vmatprep.mubr.msk.f32.mxu0 %vm2888_vm2, %v2887_v8 }
 0x188   : > { %2569 = vmatprep.subr.mxu0 %v2887_v8 }
 0x189   : > { %2570 = vmatpush3.msra.mxu0 %v1009_v23 }
 0x18a   : > { %2571 = vmatprep.subr.mxu0 %v2887_v8 }
 0x18b   : > { %2572 = vmatpush3.msra.mxu0 %v1008_v24 }
 0x18c   : > { %2573 = vmatprep.subr.mxu0 %v2887_v8 }
 0x18d   : > { %2574 = vmatpush3.msra.mxu0 %v1007_v25 }
 0x18e   : > { %2576 = vmatmul.mubr.msk.f32.vlgmr.msra.gmra.mxu0 %vm889_vm1, %v3182_v21  ;;  %2578 = vmatprep.subr.mxu0 %v2887_v8 }
 0x18f   : > { %2579 = vmatpush3.msra.mxu0 %v1091_v26  ;;  %2586 = vmatprep.mubr.msk.f32.mxu0 %vm2888_vm2, %v2887_v8 }
 0x190   : > { %2580 = vmatprep.subr.mxu0 %v2887_v8 }
 0x191   : > { %2581 = vmatpush3.msra.mxu0 %v1090_v27 }
 0x192   : > { %2582 = vmatprep.subr.mxu0 %v2887_v8 }
 0x193   : > { %2583 = vmatpush3.msra.mxu0 %v1089_v28 }
 0x194   : > { %2584 = vmatprep.subr.mxu0 %v2887_v8 }
 0x195   : > { %2585 = vmatpush3.msra.mxu0 %v1088_v29 }
 0x196   : > { %2587 = vmatmul.mubr.msk.f32.vlgmr.msra.gmra.mxu0 %vm889_vm1, %v3182_v21  ;;  %2589 = vmatprep.subr.mxu0 %v2887_v8 }
 0x197   : > { %2591 = vmatprep.mubr.msk.f32.mxu0 %vm2888_vm2, %v2887_v8 }
 0x246   : > { %v1003_v30 = vpop.f32.mrf.mxu0 }
 0x247   : > { %v1004_v37 = vadd.f32 %v2434_v34, %v1003_v30 }
 0x248   : > { %v2566_v31 = vpop.f32.mrf.mxu0 }
 0x24e   : > { %v1084_v33 = vpop.f32.mrf.mxu0 }
 0x24f   : > { %v1085_v35 = vadd.f32 %v2436_v32, %v1084_v33  ;;  %v2468_v32 = vld [vmem:[%s3117_s25 + $0x18] sm:$0xff] }
 0x250   : > { %v2577_v36 = vpop.f32.mrf.mxu0 }
 0x251   : > { %2590 = vmatpush3.xpose.msk.msra.mxu0 %vm1169_vm3, %v1085_v35  ;;  %v1334_v36 = vld [vmem:[%s3117_s25 + $0x8] sm:$0xff] }
 0x252   : > { %2599 = vmatprep.subr.mxu0 %v2887_v8 }
 0x254   : > { %2592 = vmatmul.mubr.msk.f32.vlgmr.msra.gmra.mxu0 %vm1169_vm3, %v1004_v37  ;;  %v1333_v37 = vld [vmem:[%s3117_s25] sm:$0xff] }
 0x255   : > { %2600 = vmatpush3.msra.mxu0 %v2446_v38  ;;  %2607 = vmatprep.mubr.msk.f32.mxu0 %vm2888_vm2, %v2887_v8  ;;  %v2467_v38 = vld [vmem:[%s3117_s25 + $0x10] sm:$0xff] }
 0x256   : > { %v1165_v41 = vpop.f32.mrf.mxu0  ;;  %2601 = vmatprep.subr.mxu0 %v2887_v8 }
 0x257   : > { %v1166_v43 = vadd.f32 %v2438_v39, %v1165_v41  ;;  %2602 = vmatpush3.msra.mxu0 %v2445_v40 }
 0x258   : > { %v2588_v44 = vpop.f32.mrf.mxu0  ;;  %2603 = vmatprep.subr.mxu0 %v2887_v8 }
 0x259   : > { %2595 = vmatpush3.msra.mxu1 %v1166_v43  ;;  %2604 = vmatpush3.msra.mxu0 %v2444_v42 }
 0x25a   : > { %2605 = vmatprep.subr.mxu0 %v2887_v8  ;;  %2610 = vmatprep.subr.mxu1 %v2887_v8 }
 0x25b   : > { %2606 = vmatpush3.msra.mxu0 %v2443_v45  ;;  %v2471_v45 = vld [vmem:[%s3515_s21] ss:$0 sm:$0xff] }
 0x25c   : > { %2608 = vmatmul.mubr.msk.f32.vlgmr.msra.gmra.mxu0 %vm889_vm1, %v3182_v21  ;;  %2621 = vmatprep.subr.mxu0 %v2887_v8 }
 0x25d   : > { %2622 = vmatpush3.msra.mxu0 %v2460_v46  ;;  %2629 = vmatprep.mubr.msk.f32.mxu0 %vm2888_vm2, %v2887_v8 }
 0x25e   : > { %2623 = vmatprep.subr.mxu0 %v2887_v8 }
 0x25f   : > { %2624 = vmatpush3.msra.mxu0 %v2459_v47 }
 0x260   : > { %2625 = vmatprep.subr.mxu0 %v2887_v8 }
 0x261   : > { %2626 = vmatpush3.msra.mxu0 %v2458_v48 }
 0x262   : > { %2627 = vmatprep.subr.mxu0 %v2887_v8 }
 0x263   : > { %2628 = vmatpush3.msra.mxu0 %v2457_v49 }
 0x264   : > { %2630 = vmatmul.mubr.msk.f32.vlgmr.msra.gmra.mxu0 %vm889_vm1, %v3182_v21  ;;  %2642 = vmatprep.subr.mxu0 %v2887_v8 }
 0x265   : > { %2646 = vmatprep.mubr.msk.f32.mxu0 %vm2888_vm2, %v2887_v8  ;;  %2643 = vmatpush3.msra.mxu0 %v2468_v32 }
 0x266   : > { %2644 = vmatprep.subr.mxu0 %v2887_v8 }
 0x267   : > { %2645 = vmatpush3.msra.mxu0 %v2467_v38 }
 0x268   : > { %2656 = vmatprep.subr.mxu0 %v2887_v8 }
 0x314   : > { %v1242_v53 = vpop.f32.mrf.mxu0 }
 0x315   : > { %v1246_v54 = vmul.f32 0.25, %v1242_v53 }
 0x316   : > { %v2593_v55 = vpop.f32.mrf.mxu0 }
 0x317   : > { %v1247_v56 = vsel %vm922_vm4, %v1246_v54, -1e+30  ;;  %v1936_v55 = vld [vmem:[%s3134_s7 + $0x18] sm:$0xff] }
 0x318   : > { %v1249_v57 = vsel %vm1248_vm5, %v1247_v56, -inf }
 0x319   : > { %1250 = vmax.xlane.f32.xlu1 %v1249_v57  ;;  %v1933_v57 = vld [vmem:[%s3134_s7] sm:$0xff] }
 0x31c   : > { %v1414_v58 = vpop.f32.mrf.mxu0 }
 0x31d   : > { %v1415_v20 = vadd.f32 %v2448_v16, %v1414_v58  ;;  %v2028_v16 = vld [vmem:[%s3148_s11 + $0x20] sm:$0xff] }
 0x31e   : > { %v2609_v59 = vpop.f32.mrf.mxu0 }
 0x324   : > { %v1580_v60 = vpop.f32.mrf.mxu0 }
 0x325   : > { %v1581_v22 = vadd.f32 %v2462_v18, %v1580_v60  ;;  %v2026_v18 = vld [vmem:[%s3148_s11 + $0x10] sm:$0xff] }
 0x326   : > { %v2631_v61 = vpop.f32.mrf.mxu0 }
 0x3a2   : > { %v1251_v62 = vpop.xlane.xlu1 %1250 }
 0x3a3   : > { %v1252_v63 = vsub.f32 %v1247_v56, %v1251_v62  ;;  %v1934_v56 = vld [vmem:[%s3134_s7 + $0x8] sm:$0xff]  ;;  %v2472_v62 = vld [vmem:[%s3517_s1] ss:$0 sm:$0xff] }
 0x3a5   : > { %v1253_v0 = vmul.f32 1.442695, %v1252_v63 }
 0x3a7   : > { %2777 = vpow2.f32 %v1253_v0  ;;  %v2473_v0 = vld [vmem:[%s862_s18] ss:$0 sm:$0xff] }
 0x3b4   : > { %v2778_v2 = vpop.eup %2777 }
 0x3b5   : > { %v1255_v3 = vsel %vm1248_vm5, %v2778_v2, 0.0 }
 0x3b6   : > { %1256 = vadd.xlane.f32.xlu1 %v1255_v3 }
 0x43f   : > { %v1257_v4 = vpop.xlane.xlu1 %1256 }
 0x440   : > { %2779 = vrcp.f32 %v1257_v4  ;;  %v2039_v4 = vld [vmem:[%s3148_s11 + $0x78] sm:$0xff] }
 0x44d   : > { %v2780_v5 = vpop.eup %2779 }
 0x44e   : > { %v1259_v6 = vmul.f32 %v2780_v5, %v2778_v2  ;;  %v2038_v5 = vld [vmem:[%s3148_s11 + $0x70] sm:$0xff] }
 0x450   : > { %2597 = vmatmul.mubr.msk.f32.vlgmr.msra.gmra.mxu1 %vm1248_vm5, %v1259_v6  ;;  %v2037_v6 = vld [vmem:[%s3148_s11 + $0x68] sm:$0xff] }
 0x451   : > { %2611 = vmatpush3.msra.mxu1 %v2453_v7  ;;  %2618 = vmatprep.mubr.msk.f32.mxu1 %vm2888_vm2, %v2887_v8  ;;  %v2036_v7 = vld [vmem:[%s3148_s11 + $0x60] sm:$0xff] }
 0x452   : > { %2612 = vmatprep.subr.mxu1 %v2887_v8 }
 0x453   : > { %2613 = vmatpush3.msra.mxu1 %v2452_v9  ;;  %v2035_v9 = vld [vmem:[%s3148_s11 + $0x58] sm:$0xff] }
 0x454   : > { %2614 = vmatprep.subr.mxu1 %v2887_v8 }
 0x455   : > { %2615 = vmatpush3.msra.mxu1 %v2451_v10  ;;  %v2034_v10 = vld [vmem:[%s3148_s11 + $0x50] sm:$0xff] }
 0x456   : > { %2616 = vmatprep.subr.mxu1 %v2887_v8 }
 0x457   : > { %2617 = vmatpush3.msra.mxu1 %v2450_v11  ;;  %v2033_v11 = vld [vmem:[%s3148_s11 + $0x48] sm:$0xff] }
 0x458   : > { %2619 = vmatmul.mubr.msk.f32.vlgmr.msra.gmra.mxu1 %vm889_vm1, %v3182_v21  ;;  %2632 = vmatprep.subr.mxu1 %v2887_v8 }
 0x459   : > { %2634 = vmatprep.mubr.msk.f32.mxu1 %vm2888_vm2, %v2887_v8 }
 0x510   : > { %v1329_v12 = vpop.f32.mrf.mxu1 }
 0x512   : > { %v2598_v13 = vpop.f32.mrf.mxu1 }
 0x513   : > { %v2031_v13 = vld [vmem:[%s3148_s11 + $0x38] sm:$0xff] }
 0x518   : > { %v1497_v15 = vpop.f32.mrf.mxu1 }
 0x519   : > { %v1498_v17 = vadd.f32 %v2455_v14, %v1497_v15  ;;  %v2030_v14 = vld [vmem:[%s3148_s11 + $0x30] sm:$0xff]  ;;  %v2029_v15 = vld [vmem:[%s3148_s11 + $0x28] sm:$0xff] }
 0x51a   : > { %v2620_v19 = vpop.f32.mrf.mxu1 }
 0x51b   : > { %2633 = vmatpush3.xpose.msk.msra.mxu1 %vm1169_vm3, %v1498_v17  ;;  %v2027_v17 = vld [vmem:[%s3148_s11 + $0x18] sm:$0xff]  ;;  %v2025_v19 = vld [vmem:[%s3148_s11 + $0x8] sm:$0xff] }
 0x51c   : > { %2637 = vmatprep.subr.mxu1 %v2887_v8 }
 0x51e   : > { %2635 = vmatmul.mubr.msk.f32.vlgmr.msra.gmra.mxu1 %vm1169_vm3, %v1415_v20  ;;  %v2024_v20 = vld [vmem:[%s3148_s11] sm:$0xff] }
 0x51f   : > { %2638 = vmatpush3.msra.mxu1 %v1581_v22  ;;  %2639 = vmatprep.mubr.msk.f32.mxu1 %vm2888_vm2, %v2887_v8  ;;  %v2474_v22 = vld [vmem:[%s870_s8] ss:$0 sm:$0xff]  ;;  %s3519_s8 = sld [smem:[#allocation9_spill]] }
 0x520   : > { %2649 = vmatprep.subr.mxu1 %v2887_v8 }
 0x525   : > { %p2477_p1 = scmp.ne.s32.totalorder %s3519_s8, 1 }
 0x526   : > { %s3520_s19 = sld [smem:[#allocation34_spill]] (!%p2477_p1) }
 0x527   : > { %s3521_s17 = sld [smem:[#allocation35_spill]] (!%p2477_p1) }
 0x5de   : > { %v1656_v21 = vpop.f32.mrf.mxu1 }
 0x5df   : > { %v1660_v23 = vmul.f32 0.25, %v1656_v21 }
 0x5e0   : > { %v2636_v24 = vpop.f32.mrf.mxu1 }
 0x5e1   : > { %v1661_v25 = vsel %vm922_vm4, %v1660_v23, -1e+30 }
 0x5e2   : > { %v1662_v26 = vsel %vm1248_vm5, %v1661_v25, -inf }
 0x5e3   : > { %1663 = vmax.xlane.f32.xlu0 %v1662_v26 }
 0x66c   : > { %v1664_v27 = vpop.xlane.xlu0 %1663 }
 0x66d   : > { %v1665_v28 = vsub.f32 %v1661_v25, %v1664_v27 }
 0x66f   : > { %v1666_v29 = vmul.f32 1.442695, %v1665_v28 }
 0x671   : > { %2781 = vpow2.f32 %v1666_v29 }
 0x67e   : > { %v2782_v30 = vpop.eup %2781 }
 0x67f   : > { %v1668_v31 = vsel %vm1248_vm5, %v2782_v30, 0.0 }
 0x680   : > { %1669 = vadd.xlane.f32.xlu1 %v1668_v31  ;;  %v2476_v31 = vld [vmem:[%s878_s10] ss:$0 sm:$0xff] }
 0x709   : > { %v1670_v33 = vpop.xlane.xlu1 %1669 }
 0x70a   : > { %2783 = vrcp.f32 %v1670_v33 }
 0x717   : > { %v2784_v34 = vpop.eup %2783 }
 0x718   : > { %v1672_v35 = vmul.f32 %v2784_v34, %v2782_v30 }
 0x71a   : > { %2640 = vmatmul.mubr.msk.f32.vlgmr.msra.gmra.mxu1 %vm1248_vm5, %v1672_v35 }
 0x71b   : > { %2650 = vmatpush3.msra.mxu1 %v1334_v36  ;;  %2653 = vmatprep.mubr.msk.f32.mxu1 %vm2888_vm2, %v2887_v8 }
 0x71c   : > { %2651 = vmatprep.subr.mxu1 %v2887_v8 }
 0x71d   : > { %2652 = vmatpush3.msra.mxu1 %v1333_v37 }
 0x71e   : > { %2654 = vmatmul.mubr.msk.f32.vlgmr.msra.gmra.mxu1 %vm1169_vm3, %v1329_v12  ;;  %2667 = vmatprep.subr.mxu1 %v2887_v8  ;;  %v2032_v12 = vld [vmem:[%s3148_s11 + $0x40] sm:$0xff] }
 0x71f   : > { %2699 = vmatprep.mubr.msk.f32.mxu1 %vm2888_vm2, %v2887_v8  ;;  %2668 = vmatpush3.msra.mxu1 %v2039_v4 }
 0x720   : > { %2669 = vmatprep.subr.mxu1 %v2887_v8 }
 0x721   : > { %2670 = vmatpush3.msra.mxu1 %v2038_v5 }
 0x722   : > { %2671 = vmatprep.subr.mxu1 %v2887_v8 }
 0x723   : > { %2672 = vmatpush3.msra.mxu1 %v2037_v6 }
 0x724   : > { %2673 = vmatprep.subr.mxu1 %v2887_v8 }
 0x725   : > { %2674 = vmatpush3.msra.mxu1 %v2036_v7 }
 0x726   : > { %2675 = vmatprep.subr.mxu1 %v2887_v8 }
 0x727   : > { %2676 = vmatpush3.msra.mxu1 %v2035_v9 }
 0x728   : > { %2677 = vmatprep.subr.mxu1 %v2887_v8 }
 0x729   : > { %2678 = vmatpush3.msra.mxu1 %v2034_v10 }
 0x72a   : > { %2679 = vmatprep.subr.mxu1 %v2887_v8 }
 0x72b   : > { %2680 = vmatpush3.msra.mxu1 %v2033_v11 }
 0x72c   : > { %2681 = vmatprep.subr.mxu1 %v2887_v8 }
 0x72d   : > { %2682 = vmatpush3.msra.mxu1 %v2032_v12 }
 0x72e   : > { %2683 = vmatprep.subr.mxu1 %v2887_v8 }
 0x72f   : > { %2684 = vmatpush3.msra.mxu1 %v2031_v13 }
 0x730   : > { %2685 = vmatprep.subr.mxu1 %v2887_v8 }
 0x731   : > { %2686 = vmatpush3.msra.mxu1 %v2030_v14 }
 0x732   : > { %2687 = vmatprep.subr.mxu1 %v2887_v8 }
 0x733   : > { %2688 = vmatpush3.msra.mxu1 %v2029_v15 }
 0x734   : > { %2689 = vmatprep.subr.mxu1 %v2887_v8 }
 0x735   : > { %2690 = vmatpush3.msra.mxu1 %v2028_v16 }
 0x736   : > { %2691 = vmatprep.subr.mxu1 %v2887_v8 }
 0x737   : > { %2692 = vmatpush3.msra.mxu1 %v2027_v17 }
 0x738   : > { %2693 = vmatprep.subr.mxu1 %v2887_v8 }
 0x739   : > { %2694 = vmatpush3.msra.mxu1 %v2026_v18 }
 0x73a   : > { %2695 = vmatprep.subr.mxu1 %v2887_v8 }
 0x73b   : > { %2696 = vmatpush3.msra.mxu1 %v2025_v19 }
 0x73c   : > { %2697 = vmatprep.subr.mxu1 %v2887_v8 }
 0x73d   : > { %2698 = vmatpush3.msra.mxu1 %v2024_v20 }
 0x7da   : > { %v1742_v39 = vpop.f32.mrf.mxu1 }
 0x7db   : > { %2647 = vmatmul.mubr.msk.f32.vlgmr.msra.gmra.mxu0 %vm1169_vm3, %v1742_v39 }
 0x7dc   : > { %v2641_v40 = vpop.f32.mrf.mxu1  ;;  %2664 = vmatprep.mubr.msk.f32.mxu0 %vm2888_vm2, %v2887_v8  ;;  %2657 = vmatpush3.msra.mxu0 %v1936_v55 }
 0x7dd   : > { %2658 = vmatprep.subr.mxu0 %v2887_v8 }
 0x7de   : > { %v1891_v41 = vpop.f32.mrf.mxu1 }
 0x7e0   : > { %v2655_v42 = vpop.f32.mrf.mxu1 }
 0x89b   : > { %v1818_v43 = vpop.f32.mrf.mxu0 }
 0x89c   : > { %v1892_v44 = vadd.f32 %v1891_v41, %v1818_v43 }
 0x89d   : > { %v2648_v46 = vpop.f32.mrf.mxu0 }
 0x89e   : > { %v1895_v47 = vadd.f32 %v1892_v44, %v3152_v1  ;;  %v1935_v1 = vld [vmem:[%s3134_s7 + $0x10] sm:$0xff] }
 0x89f   : > { %2659 = vmatpush3.msra.mxu0 %v1935_v1 }
 0x8a0   : > { %v3298_v48 = vadd.f32 %v2471_v45, %v1895_v47  ;;  %2660 = vmatprep.subr.mxu0 %v2887_v8 }
 0x8a1   : > { %2661 = vmatpush3.msra.mxu0 %v1934_v56 }
 0x8a2   : > { %v1906_v49 = vsel %vm889_vm1, %v3298_v48, 0.0  ;;  %2662 = vmatprep.subr.mxu0 %v2887_v8 }
 0x8a3   : > { %1907 = vadd.xlane.f32.xlu0 %v1906_v49  ;;  %2663 = vmatpush3.msra.mxu0 %v1933_v57 }
 0x92c   : > { %v1908_v50 = vpop.xlane.xlu0 %1907 }
 0x92d   : > { %v1909_v51 = vmul.f32 0.03125, %v1908_v50 }
 0x92f   : > { %v1910_v52 = vsub.f32 %v3298_v48, %v1909_v51 }
 0x931   : > { %v1911_v53 = vmul.f32 %v1910_v52, %v1910_v52 }
 0x933   : > { %v1912_v54 = vsel %vm889_vm1, %v1911_v53, 0.0 }
 0x934   : > { %1913 = vadd.xlane.f32.xlu1 %v1912_v54 }
 0x9bd   : > { %v1914_v58 = vpop.xlane.xlu1 %1913 }
 0x9be   : > { %v1915_v59 = vmul.f32 0.03125, %v1914_v58 }
 0x9c0   : > { %v1916_v60 = vadd.f32 1e-05, %v1915_v59 }
 0x9c2   : > { %2785 = vrsqrt.f32 %v1916_v60 }
 0x9cf   : > { %v2786_v61 = vpop.eup %2785 }
 0x9d0   : > { %v1918_v63 = vmul.f32 %v2786_v61, %v1910_v52 }
 0x9d2   : > { %v1925_v2 = vmul.f32 %v2472_v62, %v1918_v63 }
 0x9d4   : > { %v1932_v3 = vadd.f32 %v2473_v0, %v1925_v2 }
 0x9d6   : > { %2665 = vmatmul.mubr.msk.f32.vlgmr.msra.gmra.mxu0 %vm889_vm1, %v1932_v3 }
 0xa96   : > { %v2013_v21 = vpop.f32.mrf.mxu0 }
 0xa97   : > { %v2014_v23 = vadd.f32 %v2474_v22, %v2013_v21 }
 0xa98   : > { %v2666_v24 = vpop.f32.mrf.mxu0 }
 0xa99   : > { %v2017_v25 = vmul.f32 -1.702, %v2014_v23 }
 0xa9b   : > { %v2018_v26 = vmul.f32 1.442695, %v2017_v25 }
 0xa9d   : > { %2787 = vpow2.f32 %v2018_v26 }
 0xaaa   : > { %v2788_v27 = vpop.eup %2787 }
 0xaab   : > { %v2020_v28 = vadd.f32 1.0, %v2788_v27 }
 0xaad   : > { %2789 = vrcp.f32 %v2020_v28 }
 0xaba   : > { %v2790_v29 = vpop.eup %2789 }
 0xabb   : > { %v2023_v30 = vmul.f32 %v2790_v29, %v2014_v23 }
 0xabd   : > { %2700 = vmatmul.mubr.f32.vlgmr.msra.gmra.mxu1 %v2023_v30 }
 0xb7d   : > { %v2106_v8 = vpop.f32.mrf.mxu1 }
 0xb7e   : > { %v2110_v32 = vadd.f32 %v2106_v8, %v3298_v48  ;;  %2123 = sbr.rel (%p2477_p1) target bundleno = 3256 (0xcb8), region = 104 }
 0xb7f   : > { %v2701_v33 = vpop.f32.mrf.mxu1 }
 0xb80   : > { %v2118_v34 = vadd.f32 %v2476_v31, %v2110_v32 }
 0xb82   : > { %2119 = vst.msk [vmem:[#allocation2] sm:$0xff] %vm889_vm1, %v2118_v34 }
 0xb83   : > { %v2126_v35 = vsel %vm889_vm1, %v2118_v34, 0.0  ;;  %v2478_v45 = vld [vmem:[%s3520_s19] ss:$0 sm:$0xff] }
 0xb84   : > { %2127 = vadd.xlane.f32.xlu0 %v2126_v35  ;;  %v2479_v47 = vld [vmem:[%s3521_s17] ss:$0 sm:$0xff] }
 0xc0d   : > { %v2128_v36 = vpop.xlane.xlu0 %2127 }
 0xc0e   : > { %v2129_v37 = vmul.f32 0.03125, %v2128_v36 }
 0xc10   : > { %v2130_v38 = vsub.f32 %v2118_v34, %v2129_v37 }
 0xc12   : > { %v2131_v39 = vmul.f32 %v2130_v38, %v2130_v38 }
 0xc14   : > { %v2132_v40 = vsel %vm889_vm1, %v2131_v39, 0.0 }
 0xc15   : > { %2133 = vadd.xlane.f32.xlu0 %v2132_v40 }
 0xc9e   : > { %v2134_v41 = vpop.xlane.xlu0 %2133 }
 0xc9f   : > { %v2135_v42 = vmul.f32 0.03125, %v2134_v41 }
 0xca1   : > { %v2136_v43 = vadd.f32 1e-05, %v2135_v42 }
 0xca3   : > { %2791 = vrsqrt.f32 %v2136_v43 }
 0xcb0   : > { %v2792_v44 = vpop.eup %2791 }
 0xcb1   : > { %v2138_v46 = vmul.f32 %v2792_v44, %v2130_v38 }
 0xcb3   : > { %v2145_v48 = vmul.f32 %v2478_v45, %v2138_v46 }
 0xcb5   : > { %v2152_v49 = vadd.f32 %v2479_v47, %v2145_v48 }
 0xcb7   : > { %2153 = vst.msk [vmem:[%s811_s15] sm:$0xff] %vm889_vm1, %v2152_v49 }
 0xcb8 PF: > { %s3522_s26 = sld [smem:[#allocation10_spill]]  ;;  %s2168_s2 = sshll.u32 %s811_s15, 4  ;;  %s2169_s2 = int_to_ptr.vmem [resolvable:$true] %s2168_s2 }
 0xcb9   : > { %s3523_s24 = sld [smem:[#allocation7_spill]]  ;;  %s2793_s1 = scalar_lea.vmem %s2169_s2, 128 }
 0xcba   : > { %s3525_s29 = sld [smem:[#allocation36_spill]]  ;;  %p2794_p2 = scmp.ne.s32.totalorder %s2169_s2, %s2793_s1 }
 0xcbb   : > { %s2889_s6 = smov [#allocation3]  }
 0xcbc   : > { %p2795_p4 = pnand %p2794_p2, %p3039_p3  ;;  %s2797_s7 = sshll.u32 %s2889_s6, 4  ;;  %s2798_s7 = int_to_ptr.vmem [resolvable:$false] %s2797_s7 }
 0xcbd   : > { %s2799_s18 = scalar_lea.vmem %s2798_s7, 256  ;;  %p2800_p6 = scmp.lt.s32.totalorder %s2169_s2, %s2798_s7 }
 0xcbe   : > { %s2481_s23 = sshll.u32 %s3522_s26, 7  ;;  %p2796_p5 = pneg %p2795_p4 }
 0xcbf   : > { %s3526_s25 = sand.u32 1, %s3523_s24   ;;  %p2801_p7 = scmp.lt.s32.totalorder %s2799_s18, %s2793_s1 }
 0xcc0   : > { %s2166_s21 = scalar_lea.hbm %s3525_s29, %s2481_s23  ;;  %s2155_s5 = scalar_lea.sflag [#allocation4], %s3526_s25 }
 0xcc1   : > { %p2802_p8 = por %p2801_p7, %p2800_p6 }
 0xcc3   : > { %p2803_p10 = pnand %p2802_p8, %p2796_p5 }
 0xcc5   : > { %2806 = shalt.err (!%p2803_p10)
}
 0xcc6   : > { %s2807_s20 = scalar_lea.hbm %s2166_s21, 128  ;;  %s2811_s11 = scalar_lea.hbm %s3525_s29, 256 }
 0xcc7   : > { %p2808_p11 = scmp.ne.s32.totalorder %s2166_s21, %s2807_s20  ;;  %p2812_p0 = scmp.lt.s32.totalorder %s2166_s21, %s3525_s29 }
 0xcc8   : > { %p2813_p1 = scmp.lt.s32.totalorder %s2811_s11, %s2807_s20 }
 0xcc9   : > { %p2809_p12 = pnand %p2808_p11, %p3039_p3 }
 0xcca   : > { %p2814_p2 = por %p2813_p1, %p2812_p0 }
 0xccb   : > { %p2810_p13 = pneg %p2809_p12 }
 0xccd   : > { %p2815_p4 = pnand %p2814_p2, %p2810_p13 }
 0xccf   : > { %2818 = shalt.err (!%p2815_p4)
}
 0xcd0   : > { %2702 = dma.vmem_to_hbm [thread:$0]  (%p3039_p3), %s2169_s2, 128, %s2166_s21, %s2155_s5  }
 0xcd1 PF: > { %s3527_s8 = sld [smem:[#allocation13_spill]] }
 0xcd2   : > { %s3528_s10 = sld [smem:[#allocation6_spill]] }
 0xcd7   : > { %p2708_p5 = scmp.ge.s32.totalorder %s3527_s8, 2 }
 0xcd8   : > { %s2180_s19 = sand.u32 1, %s3528_s10  }
 0xcd9   : > { %p2705_p6 = pnand %p2708_p5, %p3049_p9  ;;  %s2181_s3 = scalar_lea.sflag [#allocation4], %s2180_s19 }
 0xcdb   : > { %p2706_p7 = pneg %p2705_p6 }
 0xcdd   : > { %2852 = dma.done.wait (%p2706_p7), %s2181_s3, 128  }
 0xcde   : > { %2854 = vsyncadd (%p2706_p7), %s2181_s3, 4294967168  ;;  %s32_s23 = sadd.s32 1, %s3527_s8   ;;  %s3530_s0 = sld [smem:[#allocation7_spill]] }
 0xcdf   : > { %p29_p8 = scmp.ge.s32.totalorder %s32_s23, 6   ;;  %s3531_s30 = sld [smem:[#allocation8_spill]] }
 0xce0   : > { %s3532_s20 = sld [smem:[#allocation18_spill]] }
 0xce1   : > { %s3533_s21 = sld [smem:[#allocation11_spill]]  ;;  %31 = sbr.rel (!%p29_p8) target bundleno = 23 (0x17), region = 194 }
 0xce2   : > { %s3534_s1 = sld [smem:[#allocation12_spill]] }
 0xce3   : > { %s3535_s22 = sld [smem:[#allocation14_spill]] }
 0xce4   : > { %s3536_s2 = sld [smem:[#allocation16_spill]] }
 0xce6   :  { %2186 = vsyncpa [#allocation4], 1 }
 0xce7   :  { %2188 = vsyncpa [#allocation4 + $0x1], 1 }

</bundles_post_ra>
